<compile_context>
chip_gen: v7x
topology: tpu7x:2x2x1
jax: 0.10.0
libtpu: 0.0.40
codegen_flags: <defaults>
</compile_context>

<pallas_src>
import functools

import jax
import jax.numpy as jnp
import numpy as np
from jax import lax
from jax.experimental import pallas as pl
from jax.experimental.pallas import tpu as pltpu

_SQRT1_2 = 0.7071067811865476
_LN_EPS = 1e-5


def _fuse_kernel(pt_ref, w1_ref, g_ref, bt_ref, a_ref, mask_ref, w2_ref, b2_ref,
                 o_ref, *, shifts):
    # pt_ref  : [9*C, Mb]  im2col patches (transposed); lane m = (b_local*H + h)*W + w
    # w1_ref  : [E, 9*C]   conv1 weight, K order = ((dy,dx), c)
    # g_ref   : [1, Mb]    LayerNorm gamma tiled over lanes (gamma[m % W])
    # bt_ref  : [1, Mb]    LayerNorm beta tiled over lanes
    # a_ref   : [Mb, Mb]   block-diagonal group-averaging matrix (1/W folded in)
    # mask_ref: [9, Mb]    per-tap edge masks for the 3x3 / pad-1 stencil
    # w2_ref  : [9, E]     conv2 weight per tap
    # b2_ref  : [1, 1]     conv2 bias
    # o_ref   : [1, 1, Mb] lane-dense output block
    Mb = pt_ref.shape[1]

    # ---- conv1: a single im2col matmul on the MXU ----
    # (conv1 bias dropped: exactly cancelled by the LayerNorm mean subtraction below.)
    y = jnp.dot(w1_ref[...], pt_ref[...], preferred_element_type=jnp.float32)  # [E, Mb]

    # ---- LayerNorm over torch's last (W) axis == groups of W consecutive lanes ----
    # One MXU matmul per statistic against the precomputed averaging matrix A; no
    # in-kernel iota/selector construction and no cross-lane/sublane relayout.
    a = a_ref[...]
    mu = jnp.dot(y, a, preferred_element_type=jnp.float32)                     # [E, Mb]
    d = y - mu
    var = jnp.dot(d * d, a, preferred_element_type=jnp.float32)
    yn = d * lax.rsqrt(var + _LN_EPS)
    yn = yn * g_ref[...] + bt_ref[...]                                         # per-w affine

    # ---- exact (erf) GELU, matching torch nn.GELU() default ----
    ya = 0.5 * yn * (1.0 + lax.erf(yn * _SQRT1_2))                             # [E, Mb]

    # ---- conv2 (3x3, pad 1, Cout=1) ----
    # One MXU matmul does the E-reduction for all 9 taps at once; the 3x3 spatial gather
    # is then XLU lane rolls + precomputed edge masks. For the 3x3 / pad-1 stencil every
    # wrap position introduced by the roll falls on a masked (zeroed) lane.
    p = jnp.dot(w2_ref[...], ya, preferred_element_type=jnp.float32)           # [9, Mb]
    acc = p[4:5, :]                                    # center tap: shift 0, all-valid
    for t, s in enumerate(shifts):
        if t == 4:
            continue
        row = pltpu.roll(p[t:t + 1, :], (-s) % Mb, axis=1)                     # [1, Mb]
        acc = acc + row * mask_ref[t:t + 1, :]
    acc = acc + b2_ref[...]                                                    # [1, Mb]
    o_ref[...] = acc.reshape(o_ref.shape).astype(o_ref.dtype)


def _num_tensorcores():
    """2 on v7x (2 TensorCores per chip), else 1 (v5e / v6e are single-TC)."""
    try:
        kind = (jax.devices()[0].device_kind or "").lower()
    except Exception:
        return 1
    return 2 if ("v7" in kind or "7x" in kind) else 1


def fuse_forward(x, params, *, num_blocks=None):
    """x: [B, H, W, C] float32 -> [B, 1, H, W] float32 (PyTorch `Fuse.forward`)."""
    B, H, W, C = x.shape
    w1, b1, gamma, beta, w2, b2 = params
    del b1  # mathematically cancelled by the LayerNorm mean subtraction
    E = w1.shape[0]
    assert E == W, ("nn.LayerNorm(embed_dims) is applied to an NCHW tensor, i.e. over "
                    "the W axis -> the module only works when W == embed_dims")

    # Batch-block split: 2 "parallel" blocks only on a 2-TensorCore chip (v7x); a single
    # block elsewhere (on 1-TC v5e/v6e extra grid steps are pure overhead and halve the
    # matmul lane width).
    if num_blocks is None:
        num_blocks = _num_tensorcores()
    if B % num_blocks != 0 or ((B // num_blocks) * H * W) % 128 != 0:
        num_blocks = 1
    BB = B // num_blocks
    Mb = BB * H * W
    M = B * H * W
    K = 9 * C

    # Channel-major im2col: transpose/pad the raw (tiny) x once, then build the [9C, M]
    # rows by slicing -- avoids transposing the 9x-duplicated [M, K] patch tensor.
    x_t = jnp.transpose(x, (3, 0, 1, 2))                      # [C, B, H, W]
    x_tp = jnp.pad(x_t, ((0, 0), (0, 0), (1, 1), (1, 1)))     # spatial pad 1
    taps = [x_tp[:, :, dy:dy + H, dx:dx + W].reshape(C, M)
            for dy in range(3) for dx in range(3)]
    patches_t = jnp.concatenate(taps, axis=0)                 # [9C, M], rows = (tap, c)

    w1_t = jnp.transpose(w1, (0, 2, 3, 1)).reshape(E, K)      # [E, 9C], cols = (tap, c)
    g_row = jnp.tile(gamma, Mb // W).reshape(1, Mb)           # gamma[m % W]
    bt_row = jnp.tile(beta, Mb // W).reshape(1, Mb)
    w2_t = jnp.transpose(w2, (0, 2, 3, 1)).reshape(9, E)      # [tap, e]
    b2_c = b2.reshape(1, 1)

    # Trace-time (numpy) constants: LN block-diagonal averaging matrix + conv2 edge masks.
    m_idx = np.arange(Mb)
    grp = m_idx // W                                           # LN group = (b_local, h)
    a_mat = jnp.asarray((grp[:, None] == grp[None, :]).astype(np.float32) / W)  # [Mb,Mb]
    h_idx = (m_idx // W) % H
    w_idx = m_idx % W
    masks = np.ones((9, Mb), np.float32)
    shifts = []
    for dy in range(3):
        for dx in range(3):
            t = dy * 3 + dx
            ddy, ddx = dy - 1, dx - 1
            shifts.append(ddy * W + ddx)
            valid = np.ones(Mb, np.bool_)
            if ddy == -1:
                valid &= h_idx >= 1
            elif ddy == 1:
                valid &= h_idx <= H - 2
            if ddx == -1:
                valid &= w_idx >= 1
            elif ddx == 1:
                valid &= w_idx <= W - 2
            masks[t] = valid.astype(np.float32)
    masks = jnp.asarray(masks)

    kernel = functools.partial(_fuse_kernel, shifts=tuple(shifts))
    out = pl.pallas_call(
        kernel,
        out_shape=jax.ShapeDtypeStruct((num_blocks, 1, Mb), jnp.float32),
        grid=(num_blocks,),
        in_specs=[
            pl.BlockSpec((K, Mb), lambda i: (0, i)),      # im2col patches (per batch-block)
            pl.BlockSpec((E, K), lambda i: (0, 0)),       # conv1 weight
            pl.BlockSpec((1, Mb), lambda i: (0, 0)),      # LN gamma (lane-tiled)
            pl.BlockSpec((1, Mb), lambda i: (0, 0)),      # LN beta  (lane-tiled)
            pl.BlockSpec((Mb, Mb), lambda i: (0, 0)),     # LN group-averaging matrix
            pl.BlockSpec((9, Mb), lambda i: (0, 0)),      # conv2 edge masks
            pl.BlockSpec((9, E), lambda i: (0, 0)),       # conv2 weight taps
            pl.BlockSpec((1, 1), lambda i: (0, 0)),       # conv2 bias
        ],
        out_specs=pl.BlockSpec((1, 1, Mb), lambda i: (i, 0, 0)),
        compiler_params=pltpu.CompilerParams(dimension_semantics=("parallel",)),
    )(patches_t, w1_t, g_row, bt_row, a_mat, masks, w2_t, b2_c)
    return out.reshape(B, 1, H, W)


def fuse_reference(x, params):
    """Pure-JAX reference mirroring the torch forward (minus the dead interpolate line)."""
    w1, b1, gamma, beta, w2, b2 = params
    xt = jnp.transpose(x, (0, 3, 1, 2))                          # [B, C, H, W]
    dn = ('NCHW', 'OIHW', 'NCHW')
    y = lax.conv_general_dilated(xt, w1, (1, 1), 'SAME', dimension_numbers=dn)
    y = y + b1[None, :, None, None]
    mu = jnp.mean(y, axis=-1, keepdims=True)
    var = jnp.mean((y - mu) ** 2, axis=-1, keepdims=True)
    yn = (y - mu) / jnp.sqrt(var + _LN_EPS) * gamma + beta       # LayerNorm over last (W) dim
    ya = jax.nn.gelu(yn, approximate=False)
    out = lax.conv_general_dilated(ya, w2, (1, 1), 'SAME', dimension_numbers=dn)
    return out + b2[None, :, None, None]


if __name__ == "__main__":
    B, H, W = 2, 16, 16
    channels, embed_dims, scale = 4, 16, 2   # embed_dims == W is required by the module itself
    key = jax.random.PRNGKey(0)
    ks = jax.random.split(key, 7)
    x = jax.random.normal(ks[0], (B, H, W, channels), jnp.float32)
    w1 = 0.2 * jax.random.normal(ks[1], (embed_dims, channels, 3, 3), jnp.float32)
    b1 = 0.1 * jax.random.normal(ks[2], (embed_dims,), jnp.float32)
    gamma = 1.0 + 0.1 * jax.random.normal(ks[3], (embed_dims,), jnp.float32)
    beta = 0.1 * jax.random.normal(ks[4], (embed_dims,), jnp.float32)
    w2 = 0.2 * jax.random.normal(ks[5], (1, embed_dims, 3, 3), jnp.float32)
    b2 = 0.1 * jax.random.normal(ks[6], (1,), jnp.float32)
    params = (w1, b1, gamma, beta, w2, b2)

    fuse_jit = jax.jit(fuse_forward)
    out = jax.block_until_ready(fuse_jit(x, params))
    ref = jax.block_until_ready(fuse_reference(x, params))
    assert out.shape == (B, 1, H, W), out.shape
    np.testing.assert_allclose(np.asarray(out), np.asarray(ref), atol=3e-4, rtol=3e-4)
    print("KERNEL_OK")
</pallas_src>

<mosaic_0001>
module attributes {stable_mosaic.version = 11 : i64} {
  func.func @_fuse_kernel(%arg0: i32, %arg1: memref<36x512xf32, #tpu.memory_space<vmem>>, %arg2: memref<16x36xf32, #tpu.memory_space<vmem>>, %arg3: memref<1x512xf32, #tpu.memory_space<vmem>>, %arg4: memref<1x512xf32, #tpu.memory_space<vmem>>, %arg5: memref<512x512xf32, #tpu.memory_space<vmem>>, %arg6: memref<9x512xf32, #tpu.memory_space<vmem>>, %arg7: memref<9x16xf32, #tpu.memory_space<vmem>>, %arg8: memref<1x1xf32, #tpu.memory_space<vmem>>, %arg9: memref<1x1x512xf32, #tpu.memory_space<vmem>>) attributes {dimension_semantics = [#tpu.dimension_semantics<parallel>], iteration_bounds = array<i64: 1>, scalar_prefetch = 0 : i64, scratch_operands = 0 : i64, tpu.core_type = #tpu.core_type<tc>, window_params = [{transform_indices = @transform_0, window_bounds = array<i64: 36, 512>}, {pipeline_mode = #tpu.pipeline_mode<synchronous>, transform_indices = @transform_1, window_bounds = array<i64: 16, 36>}, {pipeline_mode = #tpu.pipeline_mode<synchronous>, transform_indices = @transform_2, window_bounds = array<i64: 1, 512>}, {pipeline_mode = #tpu.pipeline_mode<synchronous>, transform_indices = @transform_3, window_bounds = array<i64: 1, 512>}, {pipeline_mode = #tpu.pipeline_mode<synchronous>, transform_indices = @transform_4, window_bounds = array<i64: 512, 512>}, {pipeline_mode = #tpu.pipeline_mode<synchronous>, transform_indices = @transform_5, window_bounds = array<i64: 9, 512>}, {pipeline_mode = #tpu.pipeline_mode<synchronous>, transform_indices = @transform_6, window_bounds = array<i64: 9, 16>}, {pipeline_mode = #tpu.pipeline_mode<synchronous>, transform_indices = @transform_7, window_bounds = array<i64: 1, 1>}, {transform_indices = @transform_8, window_bounds = array<i64: 1, 1, 512>}]} {
    %c0 = arith.constant 0 : index
    %c0_0 = arith.constant 0 : index
    %0 = vector.load %arg2[%c0, %c0_0] : memref<16x36xf32, #tpu.memory_space<vmem>>, vector<16x36xf32>
    %c0_1 = arith.constant 0 : index
    %c0_2 = arith.constant 0 : index
    %1 = vector.load %arg1[%c0_1, %c0_2] : memref<36x512xf32, #tpu.memory_space<vmem>>, vector<36x512xf32>
    %cst = arith.constant dense<0.000000e+00> : vector<16x512xf32>
    %2 = tpu.matmul %0, %1, %cst {dimension_numbers = #tpu.dot_dimension_numbers<[1], [0], [0], [1], [0, 0, 1, 1], [], []>} : vector<16x36xf32>, vector<36x512xf32>, vector<16x512xf32> -> vector<16x512xf32>
    %c0_3 = arith.constant 0 : index
    %c0_4 = arith.constant 0 : index
    %3 = vector.load %arg5[%c0_3, %c0_4] : memref<512x512xf32, #tpu.memory_space<vmem>>, vector<512x512xf32>
    %cst_5 = arith.constant dense<0.000000e+00> : vector<16x512xf32>
    %4 = tpu.matmul %2, %3, %cst_5 {dimension_numbers = #tpu.dot_dimension_numbers<[1], [0], [0], [1], [0, 0, 1, 1], [], []>} : vector<16x512xf32>, vector<512x512xf32>, vector<16x512xf32> -> vector<16x512xf32>
    %5 = arith.subf %2, %4 : vector<16x512xf32>
    %6 = arith.mulf %5, %5 : vector<16x512xf32>
    %cst_6 = arith.constant dense<0.000000e+00> : vector<16x512xf32>
    %7 = tpu.matmul %6, %3, %cst_6 {dimension_numbers = #tpu.dot_dimension_numbers<[1], [0], [0], [1], [0, 0, 1, 1], [], []>} : vector<16x512xf32>, vector<512x512xf32>, vector<16x512xf32> -> vector<16x512xf32>
    %cst_7 = arith.constant 9.99999974E-6 : f32
    %8 = vector.broadcast %cst_7 : f32 to vector<16x512xf32>
    %9 = arith.addf %7, %8 : vector<16x512xf32>
    %10 = math.rsqrt %9 : vector<16x512xf32>
    %11 = arith.mulf %5, %10 : vector<16x512xf32>
    %c0_8 = arith.constant 0 : index
    %c0_9 = arith.constant 0 : index
    %12 = vector.load %arg3[%c0_8, %c0_9] : memref<1x512xf32, #tpu.memory_space<vmem>>, vector<1x512xf32>
    %13 = vector.broadcast %12 : vector<1x512xf32> to vector<16x512xf32>
    %14 = arith.mulf %11, %13 : vector<16x512xf32>
    %c0_10 = arith.constant 0 : index
    %c0_11 = arith.constant 0 : index
    %15 = vector.load %arg4[%c0_10, %c0_11] : memref<1x512xf32, #tpu.memory_space<vmem>>, vector<1x512xf32>
    %16 = vector.broadcast %15 : vector<1x512xf32> to vector<16x512xf32>
    %17 = arith.addf %14, %16 : vector<16x512xf32>
    %cst_12 = arith.constant 5.000000e-01 : f32
    %18 = vector.broadcast %cst_12 : f32 to vector<16x512xf32>
    %19 = arith.mulf %18, %17 : vector<16x512xf32>
    %cst_13 = arith.constant 0.707106769 : f32
    %20 = vector.broadcast %cst_13 : f32 to vector<16x512xf32>
    %21 = arith.mulf %17, %20 : vector<16x512xf32>
    %22 = math.erf %21 : vector<16x512xf32>
    %cst_14 = arith.constant 1.000000e+00 : f32
    %23 = vector.broadcast %cst_14 : f32 to vector<16x512xf32>
    %24 = arith.addf %23, %22 : vector<16x512xf32>
    %25 = arith.mulf %19, %24 : vector<16x512xf32>
    %c0_15 = arith.constant 0 : index
    %c0_16 = arith.constant 0 : index
    %26 = vector.load %arg7[%c0_15, %c0_16] : memref<9x16xf32, #tpu.memory_space<vmem>>, vector<9x16xf32>
    %cst_17 = arith.constant dense<0.000000e+00> : vector<9x512xf32>
    %27 = tpu.matmul %26, %25, %cst_17 {dimension_numbers = #tpu.dot_dimension_numbers<[1], [0], [0], [1], [0, 0, 1, 1], [], []>} : vector<9x16xf32>, vector<16x512xf32>, vector<9x512xf32> -> vector<9x512xf32>
    %28 = vector.extract_strided_slice %27 {offsets = [4, 0], sizes = [1, 512], strides = [1, 1]} : vector<9x512xf32> to vector<1x512xf32>
    %29 = vector.extract_strided_slice %27 {offsets = [0, 0], sizes = [1, 512], strides = [1, 1]} : vector<9x512xf32> to vector<1x512xf32>
    %c17_i32 = arith.constant 17 : i32
    %30 = tpu.dynamic_rotate %29 by %c17_i32 dim 1 : vector<1x512xf32>, i32 -> vector<1x512xf32>
    %c0_18 = arith.constant 0 : index
    %c0_19 = arith.constant 0 : index
    %31 = vector.load %arg6[%c0_18, %c0_19] : memref<9x512xf32, #tpu.memory_space<vmem>>, vector<1x512xf32>
    %32 = arith.mulf %30, %31 : vector<1x512xf32>
    %33 = arith.addf %28, %32 : vector<1x512xf32>
    %34 = vector.extract_strided_slice %27 {offsets = [1, 0], sizes = [1, 512], strides = [1, 1]} : vector<9x512xf32> to vector<1x512xf32>
    %c16_i32 = arith.constant 16 : i32
    %35 = tpu.dynamic_rotate %34 by %c16_i32 dim 1 : vector<1x512xf32>, i32 -> vector<1x512xf32>
    %c1 = arith.constant 1 : index
    %c0_20 = arith.constant 0 : index
    %36 = vector.load %arg6[%c1, %c0_20] : memref<9x512xf32, #tpu.memory_space<vmem>>, vector<1x512xf32>
    %37 = arith.mulf %35, %36 : vector<1x512xf32>
    %38 = arith.addf %33, %37 : vector<1x512xf32>
    %39 = vector.extract_strided_slice %27 {offsets = [2, 0], sizes = [1, 512], strides = [1, 1]} : vector<9x512xf32> to vector<1x512xf32>
    %c15_i32 = arith.constant 15 : i32
    %40 = tpu.dynamic_rotate %39 by %c15_i32 dim 1 : vector<1x512xf32>, i32 -> vector<1x512xf32>
    %c2 = arith.constant 2 : index
    %c0_21 = arith.constant 0 : index
    %41 = vector.load %arg6[%c2, %c0_21] : memref<9x512xf32, #tpu.memory_space<vmem>>, vector<1x512xf32>
    %42 = arith.mulf %40, %41 : vector<1x512xf32>
    %43 = arith.addf %38, %42 : vector<1x512xf32>
    %44 = vector.extract_strided_slice %27 {offsets = [3, 0], sizes = [1, 512], strides = [1, 1]} : vector<9x512xf32> to vector<1x512xf32>
    %c1_i32 = arith.constant 1 : i32
    %45 = tpu.dynamic_rotate %44 by %c1_i32 dim 1 : vector<1x512xf32>, i32 -> vector<1x512xf32>
    %c3 = arith.constant 3 : index
    %c0_22 = arith.constant 0 : index
    %46 = vector.load %arg6[%c3, %c0_22] : memref<9x512xf32, #tpu.memory_space<vmem>>, vector<1x512xf32>
    %47 = arith.mulf %45, %46 : vector<1x512xf32>
    %48 = arith.addf %43, %47 : vector<1x512xf32>
    %49 = vector.extract_strided_slice %27 {offsets = [5, 0], sizes = [1, 512], strides = [1, 1]} : vector<9x512xf32> to vector<1x512xf32>
    %c511_i32 = arith.constant 511 : i32
    %50 = tpu.dynamic_rotate %49 by %c511_i32 dim 1 : vector<1x512xf32>, i32 -> vector<1x512xf32>
    %c5 = arith.constant 5 : index
    %c0_23 = arith.constant 0 : index
    %51 = vector.load %arg6[%c5, %c0_23] : memref<9x512xf32, #tpu.memory_space<vmem>>, vector<1x512xf32>
    %52 = arith.mulf %50, %51 : vector<1x512xf32>
    %53 = arith.addf %48, %52 : vector<1x512xf32>
    %54 = vector.extract_strided_slice %27 {offsets = [6, 0], sizes = [1, 512], strides = [1, 1]} : vector<9x512xf32> to vector<1x512xf32>
    %c497_i32 = arith.constant 497 : i32
    %55 = tpu.dynamic_rotate %54 by %c497_i32 dim 1 : vector<1x512xf32>, i32 -> vector<1x512xf32>
    %c6 = arith.constant 6 : index
    %c0_24 = arith.constant 0 : index
    %56 = vector.load %arg6[%c6, %c0_24] : memref<9x512xf32, #tpu.memory_space<vmem>>, vector<1x512xf32>
    %57 = arith.mulf %55, %56 : vector<1x512xf32>
    %58 = arith.addf %53, %57 : vector<1x512xf32>
    %59 = vector.extract_strided_slice %27 {offsets = [7, 0], sizes = [1, 512], strides = [1, 1]} : vector<9x512xf32> to vector<1x512xf32>
    %c496_i32 = arith.constant 496 : i32
    %60 = tpu.dynamic_rotate %59 by %c496_i32 dim 1 : vector<1x512xf32>, i32 -> vector<1x512xf32>
    %c7 = arith.constant 7 : index
    %c0_25 = arith.constant 0 : index
    %61 = vector.load %arg6[%c7, %c0_25] : memref<9x512xf32, #tpu.memory_space<vmem>>, vector<1x512xf32>
    %62 = arith.mulf %60, %61 : vector<1x512xf32>
    %63 = arith.addf %58, %62 : vector<1x512xf32>
    %64 = vector.extract_strided_slice %27 {offsets = [8, 0], sizes = [1, 512], strides = [1, 1]} : vector<9x512xf32> to vector<1x512xf32>
    %c495_i32 = arith.constant 495 : i32
    %65 = tpu.dynamic_rotate %64 by %c495_i32 dim 1 : vector<1x512xf32>, i32 -> vector<1x512xf32>
    %c8 = arith.constant 8 : index
    %c0_26 = arith.constant 0 : index
    %66 = vector.load %arg6[%c8, %c0_26] : memref<9x512xf32, #tpu.memory_space<vmem>>, vector<1x512xf32>
    %67 = arith.mulf %65, %66 : vector<1x512xf32>
    %68 = arith.addf %63, %67 : vector<1x512xf32>
    %c0_27 = arith.constant 0 : index
    %c0_28 = arith.constant 0 : index
    %69 = vector.load %arg8[%c0_27, %c0_28] : memref<1x1xf32, #tpu.memory_space<vmem>>, vector<1x1xf32>
    %70 = vector.broadcast %69 : vector<1x1xf32> to vector<1x512xf32>
    %71 = arith.addf %68, %70 : vector<1x512xf32>
    %72 = vector.shape_cast %71 : vector<1x512xf32> to vector<1x1x512xf32>
    %c0_29 = arith.constant 0 : index
    %c0_30 = arith.constant 0 : index
    %c0_31 = arith.constant 0 : index
    %73 = vector.load %arg9[%c0_29, %c0_30, %c0_31] : memref<1x1x512xf32, #tpu.memory_space<vmem>>, vector<1x1x512xf32>
    tpu.vector_store %arg9[%c0_29, %c0_30, %c0_31], %72 {strides = array<i32>} : memref<1x1x512xf32, #tpu.memory_space<vmem>>, vector<1x1x512xf32>,
    return
  }
  func.func @transform_0(%arg0: i32) -> (i32, i32) {
    %c0_i32 = arith.constant 0 : i32
    %c0_i32_0 = arith.constant 0 : i32
    return %c0_i32, %arg0 : i32, i32
  }
  func.func @transform_1(%arg0: i32) -> (i32, i32) {
    %c0_i32 = arith.constant 0 : i32
    %c0_i32_0 = arith.constant 0 : i32
    %c0_i32_1 = arith.constant 0 : i32
    return %c0_i32, %c0_i32_0 : i32, i32
  }
  func.func @transform_2(%arg0: i32) -> (i32, i32) {
    %c0_i32 = arith.constant 0 : i32
    %c0_i32_0 = arith.constant 0 : i32
    %c0_i32_1 = arith.constant 0 : i32
    return %c0_i32, %c0_i32_0 : i32, i32
  }
  func.func @transform_3(%arg0: i32) -> (i32, i32) {
    %c0_i32 = arith.constant 0 : i32
    %c0_i32_0 = arith.constant 0 : i32
    %c0_i32_1 = arith.constant 0 : i32
    return %c0_i32, %c0_i32_0 : i32, i32
  }
  func.func @transform_4(%arg0: i32) -> (i32, i32) {
    %c0_i32 = arith.constant 0 : i32
    %c0_i32_0 = arith.constant 0 : i32
    %c0_i32_1 = arith.constant 0 : i32
    return %c0_i32, %c0_i32_0 : i32, i32
  }
  func.func @transform_5(%arg0: i32) -> (i32, i32) {
    %c0_i32 = arith.constant 0 : i32
    %c0_i32_0 = arith.constant 0 : i32
    %c0_i32_1 = arith.constant 0 : i32
    return %c0_i32, %c0_i32_0 : i32, i32
  }
  func.func @transform_6(%arg0: i32) -> (i32, i32) {
    %c0_i32 = arith.constant 0 : i32
    %c0_i32_0 = arith.constant 0 : i32
    %c0_i32_1 = arith.constant 0 : i32
    return %c0_i32, %c0_i32_0 : i32, i32
  }
  func.func @transform_7(%arg0: i32) -> (i32, i32) {
    %c0_i32 = arith.constant 0 : i32
    %c0_i32_0 = arith.constant 0 : i32
    %c0_i32_1 = arith.constant 0 : i32
    return %c0_i32, %c0_i32_0 : i32, i32
  }
  func.func @transform_8(%arg0: i32) -> (i32, i32, i32) {
    %c0_i32 = arith.constant 0 : i32
    %c0_i32_0 = arith.constant 0 : i32
    %c0_i32_1 = arith.constant 0 : i32
    return %arg0, %c0_i32, %c0_i32_0 : i32, i32, i32
  }
}

</mosaic_0001>

<bundles_post_ra>
// kernel: tile.13
= control target key start
LH: loop header
LB: loop body
LE: loop exit
PB: predicated region body
PF: predicated region fallthrough
CT: control target
= control target key end

     0   :  { %s40_s0 = inlined_call_operand.vmem [shape: f32[16], index: 0, kind: input, shape index: {}]   ;;  %s41_s1 = inlined_call_operand.vmem [shape: f32[32,16], index: 1, kind: output, shape index: {}]  }
   0x1   :  { %v4_v0 = vld [vmem:[%s40_s0] ss:$0 sm:$0xff] }
   0x2   :  { %5 = vst [vmem:[%s41_s1] sm:$0xff] %v4_v0  ;;  %12 = vst [vmem:[%s41_s1 + $0x8] sm:$0xff] %v4_v0 }
   0x3   :  { %13 = vst [vmem:[%s41_s1 + $0x10] sm:$0xff] %v4_v0  ;;  %14 = vst [vmem:[%s41_s1 + $0x18] sm:$0xff] %v4_v0 }

// kernel: tile.14
= control target key start
LH: loop header
LB: loop body
LE: loop exit
PB: predicated region body
PF: predicated region fallthrough
CT: control target
= control target key end

     0   :  { %s89_s8 = smov 112   ;;  %s90_s11 = smov 80   ;;  %vm3_vm0 = vcmask 130048   ;;  %vm9_vm1 = vcmask 1048448   ;;  %vm15_vm2 = vcmask 917248   ;;  %vm21_vm3 = vcmask 786048   ;;  %s142_s0 = inlined_call_operand.vmem [shape: f32[32,16], index: 0, kind: input, shape index: {}]   ;;  %s143_s1 = inlined_call_operand.vmem [shape: f32[1,512], index: 1, kind: output, shape index: {}]  }
   0x1   :  { %v72_v0 = vld [vmem:[%s142_s0 + $0x7] ss:$8 sm:$0xf]   ;;  %v74_v1 = vld [vmem:[%s142_s0 + $0x5] ss:$8 sm:$0xf]  }
   0x2   :  { %7 = vrot.lane.b32.xlu0 %v72_v0, %s89_s8  ;;  %19 = vrot.lane.b32.xlu1 %v74_v1, %s90_s11  ;;  %v73_v2 = vld [vmem:[%s142_s0 + $0x6] ss:$8 sm:$0xf]   ;;  %v75_v3 = vld [vmem:[%s142_s0 + $0x4] ss:$8 sm:$0xf]  }
   0x3   :  { %s91_s16 = smov 96   ;;  %v2_v4 = vld [vmem:[%s142_s0] ss:$8 sm:$0xf]   ;;  %s92_s19 = smov 64   ;;  %vm27_vm4 = vcmask 654848  }
   0x4   :  { %v76_v5 = vld [vmem:[%s142_s0 + $0x3] ss:$8 sm:$0xf]   ;;  %4 = vst.msk [vmem:[#allocation0] ss:$8 sm:$0xf] %vm3_vm0, %v2_v4  }
   0x5   :  { %v77_v6 = vld [vmem:[%s142_s0 + $0x2] ss:$8 sm:$0xf]   ;;  %s93_s24 = smov 48   ;;  %s94_s25 = smov 32   ;;  %vm33_vm5 = vcmask 523648  }
   0x6   :  { %13 = vrot.lane.b32.xlu0 %v73_v2, %s91_s16  ;;  %25 = vrot.lane.b32.xlu1 %v75_v3, %s92_s19  ;;  %v78_v7 = vld [vmem:[%s142_s0 + $0x1] ss:$8 sm:$0xf]   ;;  %s95_s0 = smov 16   ;;  %vm39_vm6 = vcmask 392448   ;;  %vm45_vm7 = vcmask 261248  }
   0xa   :  { %31 = vrot.lane.b32.xlu0 %v76_v5, %s93_s24  ;;  %37 = vrot.lane.b32.xlu1 %v77_v6, %s94_s25 }
   0xe   :  { %43 = vrot.lane.b32.xlu0 %v78_v7, %s95_s0 }
  0x74   :  { %v8_v8 = vpop.permute.xlu0 %7   ;;  %v20_v9 = vpop.permute.xlu1 %19  }
  0x75   :  { %10 = vst.msk [vmem:[#allocation0] ss:$8 sm:$0xf] %vm9_vm1, %v8_v8  }
  0x78   :  { %v14_v10 = vpop.permute.xlu0 %13   ;;  %v26_v11 = vpop.permute.xlu1 %25  }
  0x79   :  { %16 = vst.msk [vmem:[#allocation0] ss:$8 sm:$0xf] %vm15_vm2, %v14_v10  }
  0x7a   :  { %22 = vst.msk [vmem:[#allocation0] ss:$8 sm:$0xf] %vm21_vm3, %v20_v9  }
  0x7b   :  { %28 = vst.msk [vmem:[#allocation0] ss:$8 sm:$0xf] %vm27_vm4, %v26_v11  }
  0x7c   :  { %v32_v12 = vpop.permute.xlu0 %31   ;;  %v38_v13 = vpop.permute.xlu1 %37  }
  0x7d   :  { %34 = vst.msk [vmem:[#allocation0] ss:$8 sm:$0xf] %vm33_vm5, %v32_v12  }
  0x7e   :  { %40 = vst.msk [vmem:[#allocation0] ss:$8 sm:$0xf] %vm39_vm6, %v38_v13  }
  0x80   :  { %v44_v14 = vpop.permute.xlu0 %43  }
  0x81   :  { %46 = vst.msk [vmem:[#allocation0] ss:$8 sm:$0xf] %vm45_vm7, %v44_v14  }
  0x88   :  { %v50_v15 = vld [vmem:[#allocation0] sm:$0x1]  ;;  %v54_v16 = vld [vmem:[#allocation0 + $0x8] sm:$0x1]  ;;  %v59_v17 = vld [vmem:[#allocation0 + $0x10] sm:$0x1] }
  0x89   :  { %52 = vst [vmem:[%s143_s1] sm:$0x1] %v50_v15  ;;  %79 = vst [vmem:[%s143_s1 + $0x1] sm:$0x1] %v54_v16  ;;  %v65_v18 = vld [vmem:[#allocation0 + $0x18] sm:$0x1] }
  0x8a   :  { %80 = vst [vmem:[%s143_s1 + $0x2] sm:$0x1] %v59_v17  ;;  %81 = vst [vmem:[%s143_s1 + $0x3] sm:$0x1] %v65_v18 }

// kernel: fuse_forward.1
= control target key start
LH: loop header
LB: loop body
LE: loop exit
PB: predicated region body
PF: predicated region fallthrough
CT: control target
= control target key end

     0   :  { %v4459_v3 = vmov 0.0   ;;  %vm60_vm0 = vcmask 1043456   ;;  %vm53_vm1 = vcmask 293888   ;;  %vm1233_vm2 = vcmask 130048   ;;  %s2572_s19 = smov 17   ;;  %s2574_s20 = smov 15   ;;  %s4450_s0 = inlined_call_operand.vmem [shape: f32[36,512], index: 0, kind: input, shape index: {}]   ;;  %s4451_s4 = inlined_call_operand.vmem [shape: f32[512,512], index: 4, kind: input, shape index: {}]   ;;  %s4452_s1 = inlined_call_operand.vmem [shape: f32[16,36], index: 1, kind: input, shape index: {}]   ;;  %s4453_s7 = inlined_call_operand.<no memory space> [shape: f32[1,1], index: 7, kind: input, shape index: {}]   ;;  %s4454_s2 = inlined_call_operand.vmem [shape: f32[1,512], index: 2, kind: input, shape index: {}]   ;;  %s4455_s3 = inlined_call_operand.vmem [shape: f32[1,512], index: 3, kind: input, shape index: {}]   ;;  %s4456_s6 = inlined_call_operand.vmem [shape: f32[9,16], index: 6, kind: input, shape index: {}]   ;;  %s4457_s5 = inlined_call_operand.vmem [shape: f32[9,512], index: 5, kind: input, shape index: {}]   ;;  %s4458_s8 = inlined_call_operand.vmem [shape: f32[1,1,512], index: 8, kind: output, shape index: {}]  }
   0x1   :  { %v34_v0 = vld [vmem:[%s4450_s0 + $0x8] sm:$0xff]  ;;  %v33_v2 = vld [vmem:[%s4450_s0] sm:$0xff]  ;;  %137 = vmatprep.mubr.f32.mxu0 %v4459_v3  ;;  %214 = vmatprep.mubr.f32.mxu1 %v4459_v3  ;;  %v36_v12 = vld [vmem:[%s4450_s0 + $0x18] sm:$0xff]  ;;  %s2575_s21 = smov 1   ;;  %s2576_s22 = smov 127  }
   0x2   :  { %v38_v1 = vld [vmem:[%s4450_s0 + $0x28] sm:$0xff]  ;;  %v37_v5 = vld [vmem:[%s4450_s0 + $0x20] sm:$0xff]  ;;  %v40_v14 = vld [vmem:[%s4450_s0 + $0x38] sm:$0xff]  ;;  %s2578_s23 = smov 112   ;;  %s2579_s24 = smov 111  }
   0x3   :  { %v1966_v4 = vpack.c.bf16 %v38_v1, %v34_v0  ;;  %v42_v6 = vld [vmem:[%s4450_s0 + $0x48] sm:$0xff]  ;;  %v1968_v8 = vpack.c.bf16 %v37_v5, %v33_v2  ;;  %v41_v10 = vld [vmem:[%s4450_s0 + $0x40] sm:$0xff]  ;;  %v35_v15 = vld [vmem:[%s4450_s0 + $0x10] sm:$0xff]  ;;  %v1974_v17 = vpack.c.bf16 %v40_v14, %v36_v12 }
   0x4   :  { %v46_v7 = vld [vmem:[%s4450_s0 + $0x68] sm:$0xff]  ;;  %v45_v11 = vld [vmem:[%s4450_s0 + $0x60] sm:$0xff]  ;;  %v39_v16 = vld [vmem:[%s4450_s0 + $0x30] sm:$0xff] }
   0x5   :  { %v1970_v9 = vpack.c.bf16 %v46_v7, %v42_v6  ;;  %1967 = vmatprep.subr.bf16.mxu0 %v1966_v4  ;;  %v1972_v13 = vpack.c.bf16 %v45_v11, %v41_v10  ;;  %v1976_v18 = vpack.c.bf16 %v39_v16, %v35_v15  ;;  %v44_v19 = vld [vmem:[%s4450_s0 + $0x58] sm:$0xff]  ;;  %v50_v21 = vld [vmem:[%s4450_s0 + $0x88] sm:$0xf]  ;;  %v43_v23 = vld [vmem:[%s4450_s0 + $0x50] sm:$0xff]  ;;  %1975 = vmatprep.subr.bf16.mxu1 %v1974_v17 }
   0x6   :  { %1969 = vmatpush1.bf16.msra.mxu0 %v1968_v8  ;;  %v48_v20 = vld [vmem:[%s4450_s0 + $0x78] sm:$0xff]  ;;  %v47_v24 = vld [vmem:[%s4450_s0 + $0x70] sm:$0xff]  ;;  %v228_v25 = vld [vmem:[%s4451_s4 + $0x8] sm:$0xff] }
   0x7   :  { %1971 = vmatprep.subr.bf16.mxu0 %v1970_v9  ;;  %v1978_v22 = vpack.c.bf16 %v48_v20, %v44_v19  ;;  %v232_v26 = vld [vmem:[%s4451_s4 + $0x28] sm:$0xff]  ;;  %v49_v27 = vld [vmem:[%s4450_s0 + $0x80] sm:$0xf]  ;;  %1977 = vmatpush1.bf16.msra.mxu1 %v1976_v18  ;;  %v1980_v28 = vpack.c.bf16 %v47_v24, %v43_v23  ;;  %v52_v31 = vld [vmem:[%s4450_s0 + $0x98] sm:$0xf] }
   0x8   :  { %v227_v29 = vld [vmem:[%s4451_s4] sm:$0xff]  ;;  %v2701_v33 = vpack.c.bf16 %v232_v26, %v228_v25  ;;  %v230_v34 = vld [vmem:[%s4451_s4 + $0x18] sm:$0xff]  ;;  %v236_v35 = vld [vmem:[%s4451_s4 + $0x48] sm:$0xff] }
   0x9   :  { %v31_v30 = vld [vmem:[%s4452_s1] sm:$0xff]  ;;  %1979 = vmatprep.subr.bf16.mxu1 %v1978_v22  ;;  %v240_v36 = vld [vmem:[%s4451_s4 + $0x68] sm:$0xff]  ;;  %v51_v37 = vld [vmem:[%s4450_s0 + $0x90] sm:$0xf]  ;;  %s2577_s0 = smov 113  }
   0xa   :  { %1973 = vmatpush1.bf16.msra.mxu0 %v1972_v13  ;;  %v231_v32 = vld [vmem:[%s4451_s4 + $0x20] sm:$0xff]  ;;  %v234_v38 = vld [vmem:[%s4451_s4 + $0x38] sm:$0xff]  ;;  %v229_v40 = vld [vmem:[%s4451_s4 + $0x10] sm:$0xff]  ;;  %v2727_v42 = vpack.c.bf16 %v240_v36, %v236_v35 }
   0xb   :  { %1947 = vmatprep.subr.msk.mxu0 %vm60_vm0, %v50_v21  ;;  %v2718_v39 = vpack.c.bf16 %v231_v32, %v227_v29  ;;  %v233_v41 = vld [vmem:[%s4451_s4 + $0x30] sm:$0xff]  ;;  %1981 = vmatpush1.bf16.msra.mxu1 %v1980_v28  ;;  %v238_v43 = vld [vmem:[%s4451_s4 + $0x58] sm:$0xff]  ;;  %v235_v44 = vld [vmem:[%s4451_s4 + $0x40] sm:$0xff]  ;;  %v2754_v50 = vpack.c.bf16 %v234_v38, %v230_v34 }
   0xc   :  { %v239_v45 = vld [vmem:[%s4451_s4 + $0x60] sm:$0xff]  ;;  %1951 = vmatprep.subr.msk.mxu1 %vm60_vm0, %v52_v31  ;;  %v242_v46 = vld [vmem:[%s4451_s4 + $0x78] sm:$0xff]  ;;  %v244_v47 = vld [vmem:[%s4451_s4 + $0x88] sm:$0xff]  ;;  %v2757_v51 = vpack.c.bf16 %v233_v41, %v229_v40 }
   0xd   :  { %v248_v48 = vld [vmem:[%s4451_s4 + $0xa8] sm:$0xff]  ;;  %v2759_v52 = vpack.c.bf16 %v239_v45, %v235_v44  ;;  %v237_v53 = vld [vmem:[%s4451_s4 + $0x50] sm:$0xff]  ;;  %v2769_v55 = vpack.c.bf16 %v242_v46, %v238_v43  ;;  %v246_v57 = vld [vmem:[%s4451_s4 + $0x98] sm:$0xff] }
   0xe   :  { %1948 = vmatpush1.msk.msra.mxu0 %vm60_vm0, %v49_v27  ;;  %v32_v49 = vld [vmem:[%s4452_s1 + $0x8] sm:$0xff]  ;;  %v241_v54 = vld [vmem:[%s4451_s4 + $0x70] sm:$0xff]  ;;  %v2771_v56 = vpack.c.bf16 %v248_v48, %v244_v47  ;;  %v243_v58 = vld [vmem:[%s4451_s4 + $0x80] sm:$0xff] }
   0xf   :  { %1949 = vmatmul.mubr.msk.f32.vlgmr.msra.gmra.mrb[0].mxu0 %vm53_vm1, %v31_v30  ;;  %1983 = vmatprep.subr.bf16.mxu0 %v2701_v33  ;;  %v247_v59 = vld [vmem:[%s4451_s4 + $0xa0] sm:$0xff]  ;;  %v250_v60 = vld [vmem:[%s4451_s4 + $0xb8] sm:$0xff]  ;;  %v252_v61 = vld [vmem:[%s4451_s4 + $0xc8] sm:$0xff]  ;;  %v2797_v63 = vpack.c.bf16 %v241_v54, %v237_v53 }
  0x10   :  { %143 = vmatprep.mubr.f32.mxu0 %v4459_v3  ;;  %1985 = vmatpush1.bf16.msra.mxu0 %v2718_v39  ;;  %v256_v62 = vld [vmem:[%s4451_s4 + $0xe8] sm:$0xff]  ;;  %v2799_v0 = vpack.c.bf16 %v247_v59, %v243_v58  ;;  %v245_v1 = vld [vmem:[%s4451_s4 + $0x90] sm:$0xff]  ;;  %v2809_v4 = vpack.c.bf16 %v250_v60, %v246_v57  ;;  %v254_v6 = vld [vmem:[%s4451_s4 + $0xd8] sm:$0xff] }
  0x11   :  { %1952 = vmatpush1.msk.msra.mxu1 %vm60_vm0, %v51_v37  ;;  %1987 = vmatprep.subr.bf16.mxu0 %v2727_v42  ;;  %v249_v2 = vld [vmem:[%s4451_s4 + $0xb0] sm:$0xff]  ;;  %v2811_v5 = vpack.c.bf16 %v256_v62, %v252_v61  ;;  %v251_v7 = vld [vmem:[%s4451_s4 + $0xc0] sm:$0xff]  ;;  %v258_v9 = vld [vmem:[%s4451_s4 + $0xf8] sm:$0xff] }
  0x12   :  { %1953 = vmatmul.mubr.msk.f32.vlgmr.msra.gmra.mrb[0].mxu1 %vm53_vm1, %v31_v30  ;;  %2111 = vmatprep.subr.bf16.mxu1 %v2754_v50  ;;  %v255_v8 = vld [vmem:[%s4451_s4 + $0xe0] sm:$0xff]  ;;  %v260_v10 = vld [vmem:[%s4451_s4 + $0x108] sm:$0xff]  ;;  %v2834_v12 = vpack.c.bf16 %v249_v2, %v245_v1  ;;  %v253_v14 = vld [vmem:[%s4451_s4 + $0xd0] sm:$0xff]  ;;  %v2846_v16 = vpack.c.bf16 %v258_v9, %v254_v6 }
  0x13   :  { %1950 = vmatmul.mubr.msk.f32.gmra.mrb[2].mxu0 %vm53_vm1, %v32_v49  ;;  %220 = vmatprep.mubr.f32.mxu1 %v4459_v3  ;;  %v264_v11 = vld [vmem:[%s4451_s4 + $0x128] sm:$0xff]  ;;  %v2836_v13 = vpack.c.bf16 %v255_v8, %v251_v7  ;;  %v257_v15 = vld [vmem:[%s4451_s4 + $0xf0] sm:$0xff]  ;;  %v262_v18 = vld [vmem:[%s4451_s4 + $0x118] sm:$0xff] }
  0x14   :  { %2113 = vmatpush1.bf16.msra.mxu1 %v2757_v51  ;;  %1989 = vmatpush1.bf16.msra.mxu0 %v2759_v52  ;;  %v2848_v17 = vpack.c.bf16 %v264_v11, %v260_v10  ;;  %v259_v19 = vld [vmem:[%s4451_s4 + $0x100] sm:$0xff]  ;;  %v266_v21 = vld [vmem:[%s4451_s4 + $0x138] sm:$0xff]  ;;  %v268_v22 = vld [vmem:[%s4451_s4 + $0x148] sm:$0xff]  ;;  %v2870_v24 = vpack.c.bf16 %v257_v15, %v253_v14 }
  0x15   :  { %2115 = vmatprep.subr.bf16.mxu1 %v2769_v55  ;;  %1991 = vmatprep.subr.bf16.mxu0 %v2771_v56  ;;  %v263_v20 = vld [vmem:[%s4451_s4 + $0x120] sm:$0xff]  ;;  %v272_v23 = vld [vmem:[%s4451_s4 + $0x168] sm:$0xff]  ;;  %v261_v26 = vld [vmem:[%s4451_s4 + $0x110] sm:$0xff]  ;;  %v2882_v28 = vpack.c.bf16 %v266_v21, %v262_v18 }
  0x16   :  { %1954 = vmatmul.mubr.msk.f32.gmra.mrb[2].mxu1 %vm53_vm1, %v32_v49  ;;  %v2872_v25 = vpack.c.bf16 %v263_v20, %v259_v19  ;;  %v265_v27 = vld [vmem:[%s4451_s4 + $0x130] sm:$0xff]  ;;  %v2884_v29 = vpack.c.bf16 %v272_v23, %v268_v22  ;;  %v270_v30 = vld [vmem:[%s4451_s4 + $0x158] sm:$0xff]  ;;  %v267_v31 = vld [vmem:[%s4451_s4 + $0x140] sm:$0xff] }
  0x17   :  { %v271_v32 = vld [vmem:[%s4451_s4 + $0x160] sm:$0xff]  ;;  %v274_v34 = vld [vmem:[%s4451_s4 + $0x178] sm:$0xff]  ;;  %v276_v35 = vld [vmem:[%s4451_s4 + $0x188] sm:$0xff]  ;;  %v2906_v37 = vpack.c.bf16 %v265_v27, %v261_v26 }
  0x18   :  { %2117 = vmatpush1.bf16.msra.mxu1 %v2797_v63  ;;  %1993 = vmatpush1.bf16.msra.mxu0 %v2799_v0  ;;  %v280_v36 = vld [vmem:[%s4451_s4 + $0x1a8] sm:$0xff]  ;;  %v2908_v38 = vpack.c.bf16 %v271_v32, %v267_v31  ;;  %v269_v40 = vld [vmem:[%s4451_s4 + $0x150] sm:$0xff]  ;;  %v2918_v43 = vpack.c.bf16 %v274_v34, %v270_v30  ;;  %v278_v45 = vld [vmem:[%s4451_s4 + $0x198] sm:$0xff] }
  0x19   :  { %2119 = vmatprep.subr.bf16.mxu1 %v2809_v4  ;;  %1995 = vmatprep.subr.bf16.mxu0 %v2811_v5  ;;  %v273_v41 = vld [vmem:[%s4451_s4 + $0x170] sm:$0xff]  ;;  %v2920_v44 = vpack.c.bf16 %v280_v36, %v276_v35  ;;  %v275_v46 = vld [vmem:[%s4451_s4 + $0x180] sm:$0xff]  ;;  %v282_v48 = vld [vmem:[%s4451_s4 + $0x1b8] sm:$0xff] }
  0x1a   :  { %v279_v47 = vld [vmem:[%s4451_s4 + $0x1a0] sm:$0xff]  ;;  %v284_v49 = vld [vmem:[%s4451_s4 + $0x1c8] sm:$0xff]  ;;  %v2942_v54 = vpack.c.bf16 %v273_v41, %v269_v40  ;;  %v277_v58 = vld [vmem:[%s4451_s4 + $0x190] sm:$0xff]  ;;  %v2954_v60 = vpack.c.bf16 %v282_v48, %v278_v45 }
  0x1b   :  { %v288_v53 = vld [vmem:[%s4451_s4 + $0x1e8] sm:$0xff]  ;;  %v2944_v57 = vpack.c.bf16 %v279_v47, %v275_v46  ;;  %v281_v59 = vld [vmem:[%s4451_s4 + $0x1b0] sm:$0xff]  ;;  %v286_v62 = vld [vmem:[%s4451_s4 + $0x1d8] sm:$0xff] }
  0x1c   :  { %2121 = vmatpush1.bf16.msra.mxu1 %v2834_v12  ;;  %1997 = vmatpush1.bf16.msra.mxu0 %v2836_v13  ;;  %v2956_v61 = vpack.c.bf16 %v288_v53, %v284_v49  ;;  %v283_v1 = vld [vmem:[%s4451_s4 + $0x1c0] sm:$0xff]  ;;  %v290_v6 = vld [vmem:[%s4451_s4 + $0x1f8] sm:$0xff]  ;;  %v292_v7 = vld [vmem:[%s4451_s4 + $0x208] sm:$0xff]  ;;  %v2978_v9 = vpack.c.bf16 %v281_v59, %v277_v58 }
  0x1d   :  { %2123 = vmatprep.subr.bf16.mxu1 %v2846_v16  ;;  %1999 = vmatprep.subr.bf16.mxu0 %v2848_v17  ;;  %v287_v2 = vld [vmem:[%s4451_s4 + $0x1e0] sm:$0xff]  ;;  %v296_v8 = vld [vmem:[%s4451_s4 + $0x228] sm:$0xff]  ;;  %v285_v11 = vld [vmem:[%s4451_s4 + $0x1d0] sm:$0xff]  ;;  %v2990_v15 = vpack.c.bf16 %v290_v6, %v286_v62 }
  0x1e   :  { %v2980_v10 = vpack.c.bf16 %v287_v2, %v283_v1  ;;  %v289_v14 = vld [vmem:[%s4451_s4 + $0x1f0] sm:$0xff]  ;;  %v2992_v18 = vpack.c.bf16 %v296_v8, %v292_v7  ;;  %v294_v19 = vld [vmem:[%s4451_s4 + $0x218] sm:$0xff]  ;;  %v291_v20 = vld [vmem:[%s4451_s4 + $0x200] sm:$0xff] }
  0x1f   :  { %v295_v21 = vld [vmem:[%s4451_s4 + $0x220] sm:$0xff]  ;;  %v298_v22 = vld [vmem:[%s4451_s4 + $0x238] sm:$0xff]  ;;  %v300_v23 = vld [vmem:[%s4451_s4 + $0x248] sm:$0xff]  ;;  %v3014_v27 = vpack.c.bf16 %v289_v14, %v285_v11 }
  0x20   :  { %2125 = vmatpush1.bf16.msra.mxu1 %v2870_v24  ;;  %2001 = vmatpush1.bf16.msra.mxu0 %v2872_v25  ;;  %v304_v26 = vld [vmem:[%s4451_s4 + $0x268] sm:$0xff]  ;;  %v3016_v30 = vpack.c.bf16 %v295_v21, %v291_v20  ;;  %v293_v31 = vld [vmem:[%s4451_s4 + $0x210] sm:$0xff]  ;;  %v3026_v34 = vpack.c.bf16 %v298_v22, %v294_v19  ;;  %v302_v36 = vld [vmem:[%s4451_s4 + $0x258] sm:$0xff] }
  0x21   :  { %2127 = vmatprep.subr.bf16.mxu1 %v2882_v28  ;;  %2003 = vmatprep.subr.bf16.mxu0 %v2884_v29  ;;  %v297_v32 = vld [vmem:[%s4451_s4 + $0x230] sm:$0xff]  ;;  %v3028_v35 = vpack.c.bf16 %v304_v26, %v300_v23  ;;  %v299_v40 = vld [vmem:[%s4451_s4 + $0x240] sm:$0xff]  ;;  %v306_v45 = vld [vmem:[%s4451_s4 + $0x278] sm:$0xff] }
  0x22   :  { %v303_v41 = vld [vmem:[%s4451_s4 + $0x260] sm:$0xff]  ;;  %v308_v46 = vld [vmem:[%s4451_s4 + $0x288] sm:$0xff]  ;;  %v3050_v48 = vpack.c.bf16 %v297_v32, %v293_v31  ;;  %v301_v53 = vld [vmem:[%s4451_s4 + $0x250] sm:$0xff]  ;;  %v3062_v59 = vpack.c.bf16 %v306_v45, %v302_v36 }
  0x23   :  { %v312_v47 = vld [vmem:[%s4451_s4 + $0x2a8] sm:$0xff]  ;;  %v3052_v49 = vpack.c.bf16 %v303_v41, %v299_v40  ;;  %v305_v58 = vld [vmem:[%s4451_s4 + $0x270] sm:$0xff]  ;;  %v310_v1 = vld [vmem:[%s4451_s4 + $0x298] sm:$0xff] }
  0x24   :  { %2129 = vmatpush1.bf16.msra.mxu1 %v2906_v37  ;;  %2005 = vmatpush1.bf16.msra.mxu0 %v2908_v38  ;;  %v3064_v62 = vpack.c.bf16 %v312_v47, %v308_v46  ;;  %v307_v2 = vld [vmem:[%s4451_s4 + $0x280] sm:$0xff]  ;;  %v314_v7 = vld [vmem:[%s4451_s4 + $0x2b8] sm:$0xff]  ;;  %v316_v8 = vld [vmem:[%s4451_s4 + $0x2c8] sm:$0xff]  ;;  %v3086_v14 = vpack.c.bf16 %v305_v58, %v301_v53 }
  0x25   :  { %2131 = vmatprep.subr.bf16.mxu1 %v2918_v43  ;;  %2007 = vmatprep.subr.bf16.mxu0 %v2920_v44  ;;  %v311_v6 = vld [vmem:[%s4451_s4 + $0x2a0] sm:$0xff]  ;;  %v320_v11 = vld [vmem:[%s4451_s4 + $0x2e8] sm:$0xff]  ;;  %v309_v20 = vld [vmem:[%s4451_s4 + $0x290] sm:$0xff]  ;;  %v3098_v22 = vpack.c.bf16 %v314_v7, %v310_v1 }
  0x26   :  { %v3088_v19 = vpack.c.bf16 %v311_v6, %v307_v2  ;;  %v313_v21 = vld [vmem:[%s4451_s4 + $0x2b0] sm:$0xff]  ;;  %v3100_v23 = vpack.c.bf16 %v320_v11, %v316_v8  ;;  %v318_v26 = vld [vmem:[%s4451_s4 + $0x2d8] sm:$0xff]  ;;  %v315_v31 = vld [vmem:[%s4451_s4 + $0x2c0] sm:$0xff] }
  0x27   :  { %v319_v32 = vld [vmem:[%s4451_s4 + $0x2e0] sm:$0xff]  ;;  %v322_v36 = vld [vmem:[%s4451_s4 + $0x2f8] sm:$0xff]  ;;  %v324_v40 = vld [vmem:[%s4451_s4 + $0x308] sm:$0xff]  ;;  %v3122_v45 = vpack.c.bf16 %v313_v21, %v309_v20 }
  0x28   :  { %2133 = vmatpush1.bf16.msra.mxu1 %v2942_v54  ;;  %2009 = vmatpush1.bf16.msra.mxu0 %v2944_v57  ;;  %4542 = vst [vmem:[#allocation3_spill] sm:$0xff] %v3100_v23  ;;  %v328_v41 = vld [vmem:[%s4451_s4 + $0x328] sm:$0xff]  ;;  %v3124_v46 = vpack.c.bf16 %v319_v32, %v315_v31  ;;  %v317_v47 = vld [vmem:[%s4451_s4 + $0x2d0] sm:$0xff]  ;;  %v3134_v58 = vpack.c.bf16 %v322_v36, %v318_v26  ;;  %v326_v2 = vld [vmem:[%s4451_s4 + $0x318] sm:$0xff] }
  0x29   :  { %2135 = vmatprep.subr.bf16.mxu1 %v2954_v60  ;;  %2011 = vmatprep.subr.bf16.mxu0 %v2956_v61  ;;  %v321_v53 = vld [vmem:[%s4451_s4 + $0x2f0] sm:$0xff]  ;;  %v3136_v1 = vpack.c.bf16 %v328_v41, %v324_v40  ;;  %v323_v6 = vld [vmem:[%s4451_s4 + $0x300] sm:$0xff]  ;;  %v330_v8 = vld [vmem:[%s4451_s4 + $0x338] sm:$0xff] }
  0x2a   :  { %4543 = vst [vmem:[#allocation4_spill] sm:$0xff] %v3124_v46  ;;  %4544 = vst [vmem:[#allocation5_spill] sm:$0xff] %v3134_v58  ;;  %v327_v7 = vld [vmem:[%s4451_s4 + $0x320] sm:$0xff]  ;;  %v332_v11 = vld [vmem:[%s4451_s4 + $0x348] sm:$0xff]  ;;  %v3158_v21 = vpack.c.bf16 %v321_v53, %v317_v47  ;;  %v3170_v36 = vpack.c.bf16 %v330_v8, %v326_v2 }
  0x2b   :  { %4545 = vst [vmem:[#allocation6_spill] sm:$0xff] %v3136_v1  ;;  %v336_v20 = vld [vmem:[%s4451_s4 + $0x368] sm:$0xff]  ;;  %v3160_v26 = vpack.c.bf16 %v327_v7, %v323_v6  ;;  %v325_v31 = vld [vmem:[%s4451_s4 + $0x310] sm:$0xff]  ;;  %v334_v41 = vld [vmem:[%s4451_s4 + $0x358] sm:$0xff] }
  0x2c   :  { %2137 = vmatpush1.bf16.msra.mxu1 %v2978_v9  ;;  %2013 = vmatpush1.bf16.msra.mxu0 %v2980_v10  ;;  %4546 = vst [vmem:[#allocation7_spill] sm:$0xff] %v3158_v21  ;;  %v329_v32 = vld [vmem:[%s4451_s4 + $0x330] sm:$0xff]  ;;  %4548 = vst [vmem:[#allocation9_spill] sm:$0xff] %v3170_v36  ;;  %v3172_v40 = vpack.c.bf16 %v336_v20, %v332_v11  ;;  %v331_v47 = vld [vmem:[%s4451_s4 + $0x340] sm:$0xff] }
  0x2d   :  { %2139 = vmatprep.subr.bf16.mxu1 %v2990_v15  ;;  %2015 = vmatprep.subr.bf16.mxu0 %v2992_v18  ;;  %4547 = vst [vmem:[#allocation8_spill] sm:$0xff] %v3160_v26  ;;  %v335_v53 = vld [vmem:[%s4451_s4 + $0x360] sm:$0xff]  ;;  %v338_v6 = vld [vmem:[%s4451_s4 + $0x378] sm:$0xff]  ;;  %v340_v2 = vld [vmem:[%s4451_s4 + $0x388] sm:$0xff]  ;;  %v3194_v8 = vpack.c.bf16 %v329_v32, %v325_v31 }
  0x2e   :  { %4549 = vst [vmem:[#allocation10_spill] sm:$0xff] %v3172_v40  ;;  %v344_v7 = vld [vmem:[%s4451_s4 + $0x3a8] sm:$0xff]  ;;  %v3196_v11 = vpack.c.bf16 %v335_v53, %v331_v47  ;;  %v333_v20 = vld [vmem:[%s4451_s4 + $0x350] sm:$0xff]  ;;  %v342_v31 = vld [vmem:[%s4451_s4 + $0x398] sm:$0xff] }
  0x2f   :  { %4550 = vst [vmem:[#allocation11_spill] sm:$0xff] %v3194_v8  ;;  %v337_v3 = vld [vmem:[%s4451_s4 + $0x370] sm:$0xff]  ;;  %v339_v32 = vld [vmem:[%s4451_s4 + $0x380] sm:$0xff]  ;;  %v346_v53 = vld [vmem:[%s4451_s4 + $0x3b8] sm:$0xff] }
  0x30   :  { %2141 = vmatpush1.bf16.msra.mxu1 %v3014_v27  ;;  %2017 = vmatpush1.bf16.msra.mxu0 %v3016_v30  ;;  %4551 = vst [vmem:[#allocation12_spill] sm:$0xff] %v3196_v11  ;;  %v343_v47 = vld [vmem:[%s4451_s4 + $0x3a0] sm:$0xff] }
  0x31   :  { %2143 = vmatprep.subr.bf16.mxu1 %v3026_v34  ;;  %2019 = vmatprep.subr.bf16.mxu0 %v3028_v35 }
  0x34   :  { %2145 = vmatpush1.bf16.msra.mxu1 %v3050_v48  ;;  %2021 = vmatpush1.bf16.msra.mxu0 %v3052_v49 }
  0x35   :  { %2147 = vmatprep.subr.bf16.mxu1 %v3062_v59  ;;  %2023 = vmatprep.subr.bf16.mxu0 %v3064_v62 }
  0x38   :  { %2149 = vmatpush1.bf16.msra.mxu1 %v3086_v14  ;;  %2025 = vmatpush1.bf16.msra.mxu0 %v3088_v19 }
  0x39   :  { %2151 = vmatprep.subr.bf16.mxu1 %v3098_v22  ;;  %2027 = vmatprep.subr.bf16.mxu0 %v3100_v23 }
  0x3c   :  { %2153 = vmatpush1.bf16.msra.mxu1 %v3122_v45  ;;  %2029 = vmatpush1.bf16.msra.mxu0 %v3124_v46 }
  0x3d   :  { %2155 = vmatprep.subr.bf16.mxu1 %v3134_v58  ;;  %2031 = vmatprep.subr.bf16.mxu0 %v3136_v1  ;;  %v3206_v1 = vpack.c.bf16 %v338_v6, %v334_v41  ;;  %v348_v41 = vld [vmem:[%s4451_s4 + $0x3c8] sm:$0xff] }
  0x3e   :  { %v352_v6 = vld [vmem:[%s4451_s4 + $0x3e8] sm:$0xff] }
  0x3f   :  { %4552 = vst [vmem:[#allocation13_spill] sm:$0xff] %v3206_v1 }
  0x40   :  { %2157 = vmatpush1.bf16.msra.mxu1 %v3158_v21  ;;  %2033 = vmatpush1.bf16.msra.mxu0 %v3160_v26  ;;  %v3208_v21 = vpack.c.bf16 %v344_v7, %v340_v2  ;;  %v3230_v2 = vpack.c.bf16 %v337_v3, %v333_v20  ;;  %v3232_v7 = vpack.c.bf16 %v343_v47, %v339_v32  ;;  %v347_v3 = vld [vmem:[%s4451_s4 + $0x3c0] sm:$0xff]  ;;  %v350_v32 = vld [vmem:[%s4451_s4 + $0x3d8] sm:$0xff] }
  0x41   :  { %2159 = vmatprep.subr.bf16.mxu1 %v3170_v36  ;;  %2035 = vmatprep.subr.bf16.mxu0 %v3172_v40  ;;  %v341_v40 = vld [vmem:[%s4451_s4 + $0x390] sm:$0xff]  ;;  %v3239_v26 = vpack.c.bf16 %v346_v53, %v342_v31  ;;  %v3244_v36 = vpack.c.bf16 %v352_v6, %v348_v41  ;;  %v351_v20 = vld [vmem:[%s4451_s4 + $0x3e0] sm:$0xff]  ;;  %v354_v31 = vld [vmem:[%s4451_s4 + $0x3f8] sm:$0xff] }
  0x42   :  { %4553 = vst [vmem:[#allocation14_spill] sm:$0xff] %v3208_v21  ;;  %4554 = vst [vmem:[#allocation15_spill] sm:$0xff] %v3230_v2  ;;  %v3262_v53 = vpack.c.bf16 %v351_v20, %v347_v3  ;;  %v3266_v41 = vpack.c.bf16 %v354_v31, %v350_v32  ;;  %v349_v6 = vld [vmem:[%s4451_s4 + $0x3d0] sm:$0xff]  ;;  %v360_v3 = vld [vmem:[%s4451_s4 + $0x428] sm:$0xff] }
  0x43   :  { %4555 = vst [vmem:[#allocation16_spill] sm:$0xff] %v3232_v7  ;;  %4556 = vst [vmem:[#allocation17_spill] sm:$0xff] %v3239_v26  ;;  %v358_v20 = vld [vmem:[%s4451_s4 + $0x418] sm:$0xff] }
  0x44   :  { %2161 = vmatpush1.bf16.msra.mxu1 %v3194_v8  ;;  %2037 = vmatpush1.bf16.msra.mxu0 %v3196_v11  ;;  %v345_v8 = vld [vmem:[%s4451_s4 + $0x3b0] sm:$0xff]  ;;  %4557 = vst [vmem:[#allocation18_spill] sm:$0xff] %v3244_v36  ;;  %4559 = vst [vmem:[#allocation20_spill] sm:$0xff] %v3262_v53 }
  0x45   :  { %2163 = vmatprep.subr.bf16.mxu1 %v3206_v1  ;;  %2039 = vmatprep.subr.bf16.mxu0 %v3208_v21  ;;  %v3260_v47 = vpack.c.bf16 %v345_v8, %v341_v40  ;;  %4560 = vst [vmem:[#allocation21_spill] sm:$0xff] %v3266_v41  ;;  %v353_v21 = vld [vmem:[%s4451_s4 + $0x3f0] sm:$0xff]  ;;  %v356_v8 = vld [vmem:[%s4451_s4 + $0x408] sm:$0xff]  ;;  %v375_v1 = vld [vmem:[%s4451_s4 + $0x4a0] sm:$0xff] }
  0x46   :  { %v3276_v40 = vpack.c.bf16 %v353_v21, %v349_v6  ;;  %v3289_v32 = vpack.c.bf16 %v360_v3, %v356_v8  ;;  %v362_v21 = vld [vmem:[%s4451_s4 + $0x438] sm:$0xff]  ;;  %v355_v6 = vld [vmem:[%s4451_s4 + $0x400] sm:$0xff]  ;;  %v357_v8 = vld [vmem:[%s4451_s4 + $0x410] sm:$0xff] }
  0x47   :  { %4558 = vst [vmem:[#allocation19_spill] sm:$0xff] %v3260_v47  ;;  %v3294_v31 = vpack.c.bf16 %v362_v21, %v358_v20  ;;  %v361_v3 = vld [vmem:[%s4451_s4 + $0x430] sm:$0xff]  ;;  %v364_v20 = vld [vmem:[%s4451_s4 + $0x448] sm:$0xff] }
  0x48   :  { %2165 = vmatpush1.bf16.msra.mxu1 %v3230_v2  ;;  %2041 = vmatpush1.bf16.msra.mxu0 %v3232_v7  ;;  %4561 = vst [vmem:[#allocation22_spill] sm:$0xff] %v3276_v40  ;;  %4562 = vst [vmem:[#allocation23_spill] sm:$0xff] %v3289_v32  ;;  %v368_v21 = vld [vmem:[%s4451_s4 + $0x468] sm:$0xff]  ;;  %v367_v7 = vld [vmem:[%s4451_s4 + $0x460] sm:$0xff] }
  0x49   :  { %2167 = vmatprep.subr.bf16.mxu1 %v3239_v26  ;;  %2043 = vmatprep.subr.bf16.mxu0 %v3244_v36  ;;  %4563 = vst [vmem:[#allocation24_spill] sm:$0xff] %v3294_v31  ;;  %v3326_v36 = vpack.c.bf16 %v361_v3, %v357_v8  ;;  %v3336_v2 = vpack.c.bf16 %v368_v21, %v364_v20  ;;  %v372_v8 = vld [vmem:[%s4451_s4 + $0x488] sm:$0xff]  ;;  %v378_v3 = vld [vmem:[%s4451_s4 + $0x4b8] sm:$0xff] }
  0x4b   :  { %4566 = vst [vmem:[#allocation27_spill] sm:$0xff] %v3326_v36  ;;  %4568 = vst [vmem:[#allocation29_spill] sm:$0xff] %v3336_v2 }
  0x4c   :  { %2169 = vmatpush1.bf16.msra.mxu1 %v3260_v47  ;;  %2045 = vmatpush1.bf16.msra.mxu0 %v3262_v53  ;;  %v363_v47 = vld [vmem:[%s4451_s4 + $0x440] sm:$0xff] }
  0x4d   :  { %2171 = vmatprep.subr.bf16.mxu1 %v3266_v41  ;;  %2047 = vmatprep.subr.bf16.mxu0 %v3289_v32  ;;  %v370_v32 = vld [vmem:[%s4451_s4 + $0x478] sm:$0xff]  ;;  %v3364_v20 = vpack.c.bf16 %v367_v7, %v363_v47 }
  0x4f   :  { %4570 = vst [vmem:[#allocation31_spill] sm:$0xff] %v3364_v20 }
  0x50   :  { %2173 = vmatpush1.bf16.msra.mxu1 %v3276_v40  ;;  %v359_v40 = vld [vmem:[%s4451_s4 + $0x420] sm:$0xff] }
  0x51   :  { %2175 = vmatprep.subr.bf16.mxu1 %v3294_v31  ;;  %v366_v31 = vld [vmem:[%s4451_s4 + $0x458] sm:$0xff]  ;;  %v3324_v41 = vpack.c.bf16 %v359_v40, %v355_v6  ;;  %v365_v40 = vld [vmem:[%s4451_s4 + $0x450] sm:$0xff] }
  0x52   :  { %v3338_v11 = vpack.c.bf16 %v370_v32, %v366_v31  ;;  %v369_v6 = vld [vmem:[%s4451_s4 + $0x470] sm:$0xff]  ;;  %v376_v32 = vld [vmem:[%s4451_s4 + $0x4a8] sm:$0xff]  ;;  %v374_v31 = vld [vmem:[%s4451_s4 + $0x498] sm:$0xff] }
  0x53   :  { %4565 = vst [vmem:[#allocation26_spill] sm:$0xff] %v3324_v41  ;;  %v3366_v21 = vpack.c.bf16 %v369_v6, %v365_v40  ;;  %v3380_v7 = vpack.c.bf16 %v376_v32, %v372_v8  ;;  %v3382_v47 = vpack.c.bf16 %v378_v3, %v374_v31  ;;  %v373_v40 = vld [vmem:[%s4451_s4 + $0x490] sm:$0xff]  ;;  %v384_v8 = vld [vmem:[%s4451_s4 + $0x4e8] sm:$0xff]  ;;  %v382_v32 = vld [vmem:[%s4451_s4 + $0x4d8] sm:$0xff] }
  0x54   :  { %4569 = vst [vmem:[#allocation30_spill] sm:$0xff] %v3338_v11  ;;  %v377_v6 = vld [vmem:[%s4451_s4 + $0x4b0] sm:$0xff]  ;;  %v386_v31 = vld [vmem:[%s4451_s4 + $0x4f8] sm:$0xff] }
  0x55   :  { %4571 = vst [vmem:[#allocation32_spill] sm:$0xff] %v3366_v21  ;;  %4573 = vst [vmem:[#allocation34_spill] sm:$0xff] %v3380_v7 }
  0x56   :  { %4574 = vst [vmem:[#allocation35_spill] sm:$0xff] %v3382_v47 }
  0xe2   :  { %v3322_v53 = vpop.f32.mrb[0].mxu0 }
  0xe3   :  { %4564 = vst [vmem:[#allocation25_spill] sm:$0xff] %v3322_v53  ;;  %v3334_v26 = vpop.f32.mrb[1].mxu0 }
  0xe4   :  { %4567 = vst [vmem:[#allocation28_spill] sm:$0xff] %v3334_v26  ;;  %547 = vmatprep.mubr.f32.mxu0 %v3334_v26  ;;  %701 = vmatprep.mubr.f32.mxu1 %v3334_v26  ;;  %v371_v26 = vld [vmem:[%s4451_s4 + $0x480] sm:$0xff] }
  0xe5   :  { %548 = vmatmul.mubr.f32.vlgmr.msra.gmra.mrb[4].mxu0 %v3322_v53  ;;  %702 = vmatmul.mubr.f32.vlgmr.msra.gmra.mrb[4].mxu1 %v3322_v53  ;;  %v3376_v58 = vpop.f32.mrb[0].mxu1  ;;  %v3412_v3 = vpack.c.bf16 %v375_v1, %v371_v26  ;;  %v379_v53 = vld [vmem:[%s4451_s4 + $0x4c0] sm:$0xff]  ;;  %v3428_v1 = vpack.c.bf16 %v386_v31, %v382_v32  ;;  %v381_v26 = vld [vmem:[%s4451_s4 + $0x4d0] sm:$0xff]  ;;  %v394_v32 = vld [vmem:[%s4451_s4 + $0x538] sm:$0xff] }
  0xe6   :  { %2049 = vmatpush1.bf16.msra.mxu0 %v3324_v41  ;;  %2177 = vmatpush1.bf16.msra.mxu1 %v3326_v36  ;;  %v3374_v46 = vpop.f32.mrb[2].mxu0  ;;  %v380_v36 = vld [vmem:[%s4451_s4 + $0x4c8] sm:$0xff] }
  0xe7   :  { %4572 = vst [vmem:[#allocation33_spill] sm:$0xff] %v3374_v46  ;;  %2051 = vmatprep.subr.bf16.mxu0 %v3336_v2  ;;  %2179 = vmatprep.subr.bf16.mxu1 %v3338_v11  ;;  %v3393_v41 = vpop.f32.mrb[3].mxu0  ;;  %v3395_v2 = vpop.f32.mrb[1].mxu1  ;;  %4577 = vst [vmem:[#allocation38_spill] sm:$0xff] %v3412_v3  ;;  %v3414_v11 = vpack.c.bf16 %v377_v6, %v373_v40  ;;  %v385_v40 = vld [vmem:[%s4451_s4 + $0x4f0] sm:$0xff]  ;;  %v388_v6 = vld [vmem:[%s4451_s4 + $0x508] sm:$0xff] }
  0xe8   :  { %4575 = vst [vmem:[#allocation36_spill] sm:$0xff] %v3393_v41  ;;  %4576 = vst [vmem:[#allocation37_spill] sm:$0xff] %v3395_v2  ;;  %553 = vmatprep.mubr.f32.mxu0 %v3393_v41  ;;  %707 = vmatprep.mubr.f32.mxu1 %v3393_v41  ;;  %v383_v41 = vld [vmem:[%s4451_s4 + $0x4e0] sm:$0xff] }
  0xe9   :  { %554 = vmatmul.mubr.f32.gmra.mrb[6].mxu0 %v3374_v46  ;;  %708 = vmatmul.mubr.f32.gmra.mrb[6].mxu1 %v3374_v46  ;;  %4578 = vst [vmem:[#allocation39_spill] sm:$0xff] %v3414_v11  ;;  %v3422_v23 = vpop.f32.mrb[2].mxu1  ;;  %4580 = vst [vmem:[#allocation41_spill] sm:$0xff] %v3428_v1  ;;  %v3454_v31 = vpack.c.bf16 %v383_v41, %v379_v53  ;;  %v391_v46 = vld [vmem:[%s4451_s4 + $0x520] sm:$0xff]  ;;  %v389_v53 = vld [vmem:[%s4451_s4 + $0x510] sm:$0xff] }
  0xea   :  { %2053 = vmatpush1.bf16.msra.mxu0 %v3364_v20  ;;  %2181 = vmatpush1.bf16.msra.mxu1 %v3366_v21  ;;  %v3426_v20 = vpack.c.bf16 %v384_v8, %v380_v36  ;;  %v3439_v21 = vpop.f32.mrb[3].mxu1  ;;  %v392_v36 = vld [vmem:[%s4451_s4 + $0x528] sm:$0xff]  ;;  %v390_v8 = vld [vmem:[%s4451_s4 + $0x518] sm:$0xff]  ;;  %v393_v41 = vld [vmem:[%s4451_s4 + $0x530] sm:$0xff] }
  0xeb   :  { %2055 = vmatprep.subr.bf16.mxu0 %v3380_v7  ;;  %2183 = vmatprep.subr.bf16.mxu1 %v3382_v47  ;;  %4581 = vst [vmem:[#allocation42_spill] sm:$0xff] %v3454_v31  ;;  %v3456_v47 = vpack.c.bf16 %v385_v40, %v381_v26  ;;  %v387_v7 = vld [vmem:[%s4451_s4 + $0x500] sm:$0xff]  ;;  %v396_v26 = vld [vmem:[%s4451_s4 + $0x548] sm:$0xff] }
  0xec   :  { %4579 = vst [vmem:[#allocation40_spill] sm:$0xff] %v3426_v20  ;;  %624 = vmatprep.mubr.f32.mxu0 %v3395_v2  ;;  %778 = vmatprep.mubr.f32.mxu1 %v3395_v2  ;;  %v3466_v2 = vpack.c.bf16 %v392_v36, %v388_v6  ;;  %v400_v40 = vld [vmem:[%s4451_s4 + $0x568] sm:$0xff]  ;;  %v398_v6 = vld [vmem:[%s4451_s4 + $0x558] sm:$0xff] }
  0xed   :  { %4582 = vst [vmem:[#allocation43_spill] sm:$0xff] %v3456_v47  ;;  %v402_v36 = vld [vmem:[%s4451_s4 + $0x578] sm:$0xff] }
  0xee   :  { %2057 = vmatpush1.bf16.msra.mxu0 %v3412_v3  ;;  %2185 = vmatpush1.bf16.msra.mxu1 %v3414_v11  ;;  %4583 = vst [vmem:[#allocation44_spill] sm:$0xff] %v3466_v2  ;;  %v3468_v3 = vpack.c.bf16 %v394_v32, %v390_v8  ;;  %v3490_v8 = vpack.c.bf16 %v391_v46, %v387_v7  ;;  %v397_v46 = vld [vmem:[%s4451_s4 + $0x550] sm:$0xff] }
  0xef   :  { %2059 = vmatprep.subr.bf16.mxu0 %v3426_v20  ;;  %2187 = vmatprep.subr.bf16.mxu1 %v3428_v1  ;;  %v3492_v32 = vpack.c.bf16 %v393_v41, %v389_v53  ;;  %v395_v1 = vld [vmem:[%s4451_s4 + $0x540] sm:$0xff]  ;;  %v3502_v11 = vpack.c.bf16 %v400_v40, %v396_v26  ;;  %v401_v7 = vld [vmem:[%s4451_s4 + $0x570] sm:$0xff]  ;;  %v404_v53 = vld [vmem:[%s4451_s4 + $0x588] sm:$0xff] }
  0xf0   :  { %4584 = vst [vmem:[#allocation45_spill] sm:$0xff] %v3468_v3  ;;  %4585 = vst [vmem:[#allocation46_spill] sm:$0xff] %v3490_v8  ;;  %v399_v20 = vld [vmem:[%s4451_s4 + $0x560] sm:$0xff]  ;;  %v408_v41 = vld [vmem:[%s4451_s4 + $0x5a8] sm:$0xff] }
  0xf1   :  { %4586 = vst [vmem:[#allocation47_spill] sm:$0xff] %v3492_v32  ;;  %4587 = vst [vmem:[#allocation48_spill] sm:$0xff] %v3502_v11  ;;  %v406_v26 = vld [vmem:[%s4451_s4 + $0x598] sm:$0xff] }
  0xf2   :  { %2061 = vmatpush1.bf16.msra.mxu0 %v3454_v31  ;;  %2189 = vmatpush1.bf16.msra.mxu1 %v3456_v47  ;;  %v3504_v31 = vpack.c.bf16 %v402_v36, %v398_v6  ;;  %v410_v40 = vld [vmem:[%s4451_s4 + $0x5b8] sm:$0xff]  ;;  %v3526_v6 = vpack.c.bf16 %v399_v20, %v395_v1  ;;  %v3528_v36 = vpack.c.bf16 %v401_v7, %v397_v46  ;;  %v405_v20 = vld [vmem:[%s4451_s4 + $0x590] sm:$0xff]  ;;  %v412_v46 = vld [vmem:[%s4451_s4 + $0x5c8] sm:$0xff] }
  0xf3   :  { %2063 = vmatprep.subr.bf16.mxu0 %v3466_v2  ;;  %2191 = vmatprep.subr.bf16.mxu1 %v3468_v3  ;;  %v403_v3 = vld [vmem:[%s4451_s4 + $0x580] sm:$0xff]  ;;  %v3538_v47 = vpack.c.bf16 %v408_v41, %v404_v53  ;;  %v409_v1 = vld [vmem:[%s4451_s4 + $0x5b0] sm:$0xff]  ;;  %v416_v7 = vld [vmem:[%s4451_s4 + $0x5e8] sm:$0xff] }
  0xf4   :  { %4588 = vst [vmem:[#allocation49_spill] sm:$0xff] %v3504_v31  ;;  %4589 = vst [vmem:[#allocation50_spill] sm:$0xff] %v3526_v6  ;;  %v407_v2 = vld [vmem:[%s4451_s4 + $0x5a0] sm:$0xff]  ;;  %v414_v53 = vld [vmem:[%s4451_s4 + $0x5d8] sm:$0xff] }
  0xf5   :  { %4590 = vst [vmem:[#allocation51_spill] sm:$0xff] %v3528_v36  ;;  %4591 = vst [vmem:[#allocation52_spill] sm:$0xff] %v3538_v47  ;;  %v418_v41 = vld [vmem:[%s4451_s4 + $0x5f8] sm:$0xff] }
  0xf6   :  { %2065 = vmatpush1.bf16.msra.mxu0 %v3490_v8  ;;  %2193 = vmatpush1.bf16.msra.mxu1 %v3492_v32  ;;  %v3540_v8 = vpack.c.bf16 %v410_v40, %v406_v26  ;;  %v3562_v26 = vpack.c.bf16 %v407_v2, %v403_v3  ;;  %v3564_v40 = vpack.c.bf16 %v409_v1, %v405_v20  ;;  %v413_v2 = vld [vmem:[%s4451_s4 + $0x5d0] sm:$0xff]  ;;  %v420_v20 = vld [vmem:[%s4451_s4 + $0x608] sm:$0xff] }
  0xf7   :  { %2067 = vmatprep.subr.bf16.mxu0 %v3502_v11  ;;  %2195 = vmatprep.subr.bf16.mxu1 %v3504_v31  ;;  %v411_v31 = vld [vmem:[%s4451_s4 + $0x5c0] sm:$0xff]  ;;  %v3574_v32 = vpack.c.bf16 %v416_v7, %v412_v46  ;;  %v417_v3 = vld [vmem:[%s4451_s4 + $0x5f0] sm:$0xff]  ;;  %v424_v1 = vld [vmem:[%s4451_s4 + $0x628] sm:$0xff] }
  0xf8   :  { %4592 = vst [vmem:[#allocation53_spill] sm:$0xff] %v3540_v8  ;;  %4593 = vst [vmem:[#allocation54_spill] sm:$0xff] %v3562_v26  ;;  %v415_v11 = vld [vmem:[%s4451_s4 + $0x5e0] sm:$0xff]  ;;  %v422_v46 = vld [vmem:[%s4451_s4 + $0x618] sm:$0xff] }
  0xf9   :  { %4594 = vst [vmem:[#allocation55_spill] sm:$0xff] %v3564_v40  ;;  %4595 = vst [vmem:[#allocation56_spill] sm:$0xff] %v3574_v32  ;;  %v426_v7 = vld [vmem:[%s4451_s4 + $0x638] sm:$0xff] }
  0xfa   :  { %2069 = vmatpush1.bf16.msra.mxu0 %v3526_v6  ;;  %2197 = vmatpush1.bf16.msra.mxu1 %v3528_v36  ;;  %v3576_v6 = vpack.c.bf16 %v418_v41, %v414_v53  ;;  %v3598_v53 = vpack.c.bf16 %v415_v11, %v411_v31  ;;  %v3600_v41 = vpack.c.bf16 %v417_v3, %v413_v2  ;;  %v421_v11 = vld [vmem:[%s4451_s4 + $0x610] sm:$0xff]  ;;  %v428_v2 = vld [vmem:[%s4451_s4 + $0x648] sm:$0xff] }
  0xfb   :  { %2071 = vmatprep.subr.bf16.mxu0 %v3538_v47  ;;  %2199 = vmatprep.subr.bf16.mxu1 %v3540_v8  ;;  %v419_v8 = vld [vmem:[%s4451_s4 + $0x600] sm:$0xff]  ;;  %v3610_v36 = vpack.c.bf16 %v424_v1, %v420_v20  ;;  %v425_v31 = vld [vmem:[%s4451_s4 + $0x630] sm:$0xff]  ;;  %v432_v3 = vld [vmem:[%s4451_s4 + $0x668] sm:$0xff] }
  0xfc   :  { %4596 = vst [vmem:[#allocation57_spill] sm:$0xff] %v3576_v6  ;;  %4597 = vst [vmem:[#allocation58_spill] sm:$0xff] %v3598_v53  ;;  %v423_v47 = vld [vmem:[%s4451_s4 + $0x620] sm:$0xff]  ;;  %v430_v20 = vld [vmem:[%s4451_s4 + $0x658] sm:$0xff] }
  0xfd   :  { %4598 = vst [vmem:[#allocation59_spill] sm:$0xff] %v3600_v41  ;;  %4599 = vst [vmem:[#allocation60_spill] sm:$0xff] %v3610_v36  ;;  %v434_v1 = vld [vmem:[%s4451_s4 + $0x678] sm:$0xff] }
  0xfe   :  { %2073 = vmatpush1.bf16.msra.mxu0 %v3562_v26  ;;  %2201 = vmatpush1.bf16.msra.mxu1 %v3564_v40  ;;  %v3612_v26 = vpack.c.bf16 %v426_v7, %v422_v46  ;;  %v3634_v46 = vpack.c.bf16 %v423_v47, %v419_v8  ;;  %v3636_v7 = vpack.c.bf16 %v425_v31, %v421_v11  ;;  %v429_v47 = vld [vmem:[%s4451_s4 + $0x650] sm:$0xff]  ;;  %v436_v11 = vld [vmem:[%s4451_s4 + $0x688] sm:$0xff] }
  0xff   :  { %2075 = vmatprep.subr.bf16.mxu0 %v3574_v32  ;;  %2203 = vmatprep.subr.bf16.mxu1 %v3576_v6  ;;  %v427_v6 = vld [vmem:[%s4451_s4 + $0x640] sm:$0xff]  ;;  %v3646_v40 = vpack.c.bf16 %v432_v3, %v428_v2  ;;  %v433_v8 = vld [vmem:[%s4451_s4 + $0x670] sm:$0xff]  ;;  %v440_v31 = vld [vmem:[%s4451_s4 + $0x6a8] sm:$0xff] }
 0x100   :  { %4600 = vst [vmem:[#allocation61_spill] sm:$0xff] %v3612_v26  ;;  %4601 = vst [vmem:[#allocation62_spill] sm:$0xff] %v3634_v46  ;;  %v431_v32 = vld [vmem:[%s4451_s4 + $0x660] sm:$0xff]  ;;  %v438_v2 = vld [vmem:[%s4451_s4 + $0x698] sm:$0xff] }
 0x101   :  { %4602 = vst [vmem:[#allocation63_spill] sm:$0xff] %v3636_v7  ;;  %4603 = vst [vmem:[#allocation64_spill] sm:$0xff] %v3646_v40  ;;  %v442_v3 = vld [vmem:[%s4451_s4 + $0x6b8] sm:$0xff] }
 0x102   :  { %2077 = vmatpush1.bf16.msra.mxu0 %v3598_v53  ;;  %2205 = vmatpush1.bf16.msra.mxu1 %v3600_v41  ;;  %v3648_v53 = vpack.c.bf16 %v434_v1, %v430_v20  ;;  %v3670_v20 = vpack.c.bf16 %v431_v32, %v427_v6  ;;  %v3672_v1 = vpack.c.bf16 %v433_v8, %v429_v47  ;;  %v437_v32 = vld [vmem:[%s4451_s4 + $0x690] sm:$0xff]  ;;  %v444_v47 = vld [vmem:[%s4451_s4 + $0x6c8] sm:$0xff] }
 0x103   :  { %2079 = vmatprep.subr.bf16.mxu0 %v3610_v36  ;;  %2207 = vmatprep.subr.bf16.mxu1 %v3612_v26  ;;  %v435_v26 = vld [vmem:[%s4451_s4 + $0x680] sm:$0xff]  ;;  %v3682_v41 = vpack.c.bf16 %v440_v31, %v436_v11  ;;  %v441_v6 = vld [vmem:[%s4451_s4 + $0x6b0] sm:$0xff]  ;;  %v448_v8 = vld [vmem:[%s4451_s4 + $0x6e8] sm:$0xff] }
 0x104   :  { %4604 = vst [vmem:[#allocation65_spill] sm:$0xff] %v3648_v53  ;;  %4605 = vst [vmem:[#allocation66_spill] sm:$0xff] %v3670_v20  ;;  %v439_v36 = vld [vmem:[%s4451_s4 + $0x6a0] sm:$0xff]  ;;  %v446_v11 = vld [vmem:[%s4451_s4 + $0x6d8] sm:$0xff] }
 0x105   :  { %4606 = vst [vmem:[#allocation67_spill] sm:$0xff] %v3672_v1  ;;  %4607 = vst [vmem:[#allocation68_spill] sm:$0xff] %v3682_v41  ;;  %v450_v31 = vld [vmem:[%s4451_s4 + $0x6f8] sm:$0xff] }
 0x106   :  { %2081 = vmatpush1.bf16.msra.mxu0 %v3634_v46  ;;  %2209 = vmatpush1.bf16.msra.mxu1 %v3636_v7  ;;  %v3684_v46 = vpack.c.bf16 %v442_v3, %v438_v2  ;;  %v3706_v2 = vpack.c.bf16 %v439_v36, %v435_v26  ;;  %v3708_v3 = vpack.c.bf16 %v441_v6, %v437_v32  ;;  %v445_v36 = vld [vmem:[%s4451_s4 + $0x6d0] sm:$0xff]  ;;  %v452_v32 = vld [vmem:[%s4451_s4 + $0x708] sm:$0xff] }
 0x107   :  { %2083 = vmatprep.subr.bf16.mxu0 %v3646_v40  ;;  %2211 = vmatprep.subr.bf16.mxu1 %v3648_v53  ;;  %v443_v53 = vld [vmem:[%s4451_s4 + $0x6c0] sm:$0xff]  ;;  %v3718_v7 = vpack.c.bf16 %v448_v8, %v444_v47  ;;  %v449_v26 = vld [vmem:[%s4451_s4 + $0x6f0] sm:$0xff]  ;;  %v456_v6 = vld [vmem:[%s4451_s4 + $0x728] sm:$0xff] }
 0x108   :  { %4608 = vst [vmem:[#allocation69_spill] sm:$0xff] %v3684_v46  ;;  %4609 = vst [vmem:[#allocation70_spill] sm:$0xff] %v3706_v2  ;;  %v447_v40 = vld [vmem:[%s4451_s4 + $0x6e0] sm:$0xff]  ;;  %v454_v47 = vld [vmem:[%s4451_s4 + $0x718] sm:$0xff] }
 0x109   :  { %4610 = vst [vmem:[#allocation71_spill] sm:$0xff] %v3708_v3  ;;  %4611 = vst [vmem:[#allocation72_spill] sm:$0xff] %v3718_v7  ;;  %v458_v8 = vld [vmem:[%s4451_s4 + $0x738] sm:$0xff] }
 0x10a   :  { %2085 = vmatpush1.bf16.msra.mxu0 %v3670_v20  ;;  %2213 = vmatpush1.bf16.msra.mxu1 %v3672_v1  ;;  %v3720_v20 = vpack.c.bf16 %v450_v31, %v446_v11  ;;  %v3742_v11 = vpack.c.bf16 %v447_v40, %v443_v53  ;;  %v3744_v31 = vpack.c.bf16 %v449_v26, %v445_v36  ;;  %v453_v40 = vld [vmem:[%s4451_s4 + $0x710] sm:$0xff]  ;;  %v460_v36 = vld [vmem:[%s4451_s4 + $0x748] sm:$0xff] }
 0x10b   :  { %2087 = vmatprep.subr.bf16.mxu0 %v3682_v41  ;;  %2215 = vmatprep.subr.bf16.mxu1 %v3684_v46  ;;  %v451_v46 = vld [vmem:[%s4451_s4 + $0x700] sm:$0xff]  ;;  %v3754_v1 = vpack.c.bf16 %v456_v6, %v452_v32  ;;  %v457_v53 = vld [vmem:[%s4451_s4 + $0x730] sm:$0xff]  ;;  %v464_v26 = vld [vmem:[%s4451_s4 + $0x768] sm:$0xff] }
 0x10c   :  { %4612 = vst [vmem:[#allocation73_spill] sm:$0xff] %v3720_v20  ;;  %4613 = vst [vmem:[#allocation74_spill] sm:$0xff] %v3742_v11  ;;  %v455_v41 = vld [vmem:[%s4451_s4 + $0x720] sm:$0xff]  ;;  %v462_v32 = vld [vmem:[%s4451_s4 + $0x758] sm:$0xff] }
 0x10d   :  { %4614 = vst [vmem:[#allocation75_spill] sm:$0xff] %v3744_v31  ;;  %4615 = vst [vmem:[#allocation76_spill] sm:$0xff] %v3754_v1  ;;  %v466_v6 = vld [vmem:[%s4451_s4 + $0x778] sm:$0xff] }
 0x10e   :  { %2089 = vmatpush1.bf16.msra.mxu0 %v3706_v2  ;;  %2217 = vmatpush1.bf16.msra.mxu1 %v3708_v3  ;;  %v3756_v2 = vpack.c.bf16 %v458_v8, %v454_v47  ;;  %v3778_v47 = vpack.c.bf16 %v455_v41, %v451_v46  ;;  %v3780_v8 = vpack.c.bf16 %v457_v53, %v453_v40  ;;  %v461_v41 = vld [vmem:[%s4451_s4 + $0x750] sm:$0xff]  ;;  %v468_v40 = vld [vmem:[%s4451_s4 + $0x788] sm:$0xff] }
 0x10f   :  { %2091 = vmatprep.subr.bf16.mxu0 %v3718_v7  ;;  %2219 = vmatprep.subr.bf16.mxu1 %v3720_v20  ;;  %v459_v20 = vld [vmem:[%s4451_s4 + $0x740] sm:$0xff]  ;;  %v3790_v3 = vpack.c.bf16 %v464_v26, %v460_v36  ;;  %v465_v46 = vld [vmem:[%s4451_s4 + $0x770] sm:$0xff]  ;;  %v472_v53 = vld [vmem:[%s4451_s4 + $0x7a8] sm:$0xff] }
 0x110   :  { %4616 = vst [vmem:[#allocation77_spill] sm:$0xff] %v3756_v2  ;;  %4617 = vst [vmem:[#allocation78_spill] sm:$0xff] %v3778_v47  ;;  %v463_v7 = vld [vmem:[%s4451_s4 + $0x760] sm:$0xff]  ;;  %v470_v36 = vld [vmem:[%s4451_s4 + $0x798] sm:$0xff] }
 0x111   :  { %4618 = vst [vmem:[#allocation79_spill] sm:$0xff] %v3780_v8  ;;  %4619 = vst [vmem:[#allocation80_spill] sm:$0xff] %v3790_v3  ;;  %v474_v26 = vld [vmem:[%s4451_s4 + $0x7b8] sm:$0xff] }
 0x112   :  { %2093 = vmatpush1.bf16.msra.mxu0 %v3742_v11  ;;  %2221 = vmatpush1.bf16.msra.mxu1 %v3744_v31  ;;  %v3792_v11 = vpack.c.bf16 %v466_v6, %v462_v32  ;;  %v3814_v32 = vpack.c.bf16 %v463_v7, %v459_v20  ;;  %v3816_v6 = vpack.c.bf16 %v465_v46, %v461_v41  ;;  %v469_v7 = vld [vmem:[%s4451_s4 + $0x790] sm:$0xff]  ;;  %v476_v41 = vld [vmem:[%s4451_s4 + $0x7c8] sm:$0xff] }
 0x113   :  { %2095 = vmatprep.subr.bf16.mxu0 %v3754_v1  ;;  %2223 = vmatprep.subr.bf16.mxu1 %v3756_v2  ;;  %v467_v2 = vld [vmem:[%s4451_s4 + $0x780] sm:$0xff]  ;;  %v3826_v31 = vpack.c.bf16 %v472_v53, %v468_v40  ;;  %v473_v20 = vld [vmem:[%s4451_s4 + $0x7b0] sm:$0xff]  ;;  %v480_v46 = vld [vmem:[%s4451_s4 + $0x7e8] sm:$0xff] }
 0x114   :  { %4620 = vst [vmem:[#allocation81_spill] sm:$0xff] %v3792_v11  ;;  %4621 = vst [vmem:[#allocation82_spill] sm:$0xff] %v3816_v6  ;;  %v471_v1 = vld [vmem:[%s4451_s4 + $0x7a0] sm:$0xff]  ;;  %v478_v40 = vld [vmem:[%s4451_s4 + $0x7d8] sm:$0xff] }
 0x115   :  { %v482_v53 = vld [vmem:[%s4451_s4 + $0x7f8] sm:$0xff] }
 0x116   :  { %2097 = vmatpush1.bf16.msra.mxu0 %v3778_v47  ;;  %2225 = vmatpush1.bf16.msra.mxu1 %v3780_v8  ;;  %v3828_v47 = vpack.c.bf16 %v474_v26, %v470_v36  ;;  %v3850_v36 = vpack.c.bf16 %v471_v1, %v467_v2  ;;  %v3852_v26 = vpack.c.bf16 %v473_v20, %v469_v7  ;;  %v477_v1 = vld [vmem:[%s4451_s4 + $0x7d0] sm:$0xff] }
 0x117   :  { %2099 = vmatprep.subr.bf16.mxu0 %v3790_v3  ;;  %2227 = vmatprep.subr.bf16.mxu1 %v3792_v11  ;;  %v475_v11 = vld [vmem:[%s4451_s4 + $0x7c0] sm:$0xff]  ;;  %v3859_v3 = vpack.c.bf16 %v480_v46, %v476_v41  ;;  %v3861_v8 = vpack.c.bf16 %v482_v53, %v478_v40  ;;  %v481_v2 = vld [vmem:[%s4451_s4 + $0x7f0] sm:$0xff] }
 0x118   :  { %v3876_v20 = vpack.c.bf16 %v481_v2, %v477_v1  ;;  %v4650_v41 = vld [vmem:[#allocation27_spill] sm:$0xff]  ;;  %v4651_v46 = vld [vmem:[#allocation29_spill] sm:$0xff]  ;;  %v4652_v40 = vld [vmem:[#allocation30_spill] sm:$0xff] }
 0x119   :  { %v4653_v53 = vld [vmem:[#allocation31_spill] sm:$0xff]  ;;  %v4654_v1 = vld [vmem:[#allocation32_spill] sm:$0xff]  ;;  %v4655_v2 = vld [vmem:[#allocation34_spill] sm:$0xff] }
 0x11a   :  { %2101 = vmatpush1.bf16.msra.mxu0 %v3814_v32  ;;  %2229 = vmatpush1.bf16.msra.mxu1 %v3816_v6  ;;  %v479_v6 = vld [vmem:[%s4451_s4 + $0x7e0] sm:$0xff] }
 0x11b   :  { %2103 = vmatprep.subr.bf16.mxu0 %v3826_v31  ;;  %2231 = vmatprep.subr.bf16.mxu1 %v3828_v47  ;;  %v3874_v7 = vpack.c.bf16 %v479_v6, %v475_v11  ;;  %v4649_v6 = vld [vmem:[#allocation26_spill] sm:$0xff] }
 0x11e   :  { %2105 = vmatpush1.bf16.msra.mxu0 %v3850_v36  ;;  %2233 = vmatpush1.bf16.msra.mxu1 %v3852_v26 }
 0x11f   :  { %2107 = vmatprep.subr.bf16.mxu0 %v3859_v3  ;;  %2235 = vmatprep.subr.bf16.mxu1 %v3861_v8 }
 0x122   :  { %2109 = vmatpush1.bf16.msra.mxu0 %v3874_v7  ;;  %2237 = vmatpush1.bf16.msra.mxu1 %v3876_v20 }
 0x123   :  { %2239 = vmatprep.subr.bf16.mxu0 %v2701_v33  ;;  %2367 = vmatprep.subr.bf16.mxu1 %v2754_v50  ;;  %v4622_v33 = vld [vmem:[#allocation3_spill] sm:$0xff] }
 0x124   :  { %v4625_v50 = vld [vmem:[#allocation7_spill] sm:$0xff] }
 0x125   :  { %625 = vmatmul.mubr.f32.vlgmr.msra.gmra.mrb[4].mxu0 %v3376_v58  ;;  %779 = vmatmul.mubr.f32.vlgmr.msra.gmra.mrb[4].mxu1 %v3376_v58 }
 0x126   :  { %630 = vmatprep.mubr.f32.mxu0 %v3439_v21  ;;  %784 = vmatprep.mubr.f32.mxu1 %v3439_v21 }
 0x127   :  { %2241 = vmatpush1.bf16.msra.mxu0 %v2718_v39  ;;  %2369 = vmatpush1.bf16.msra.mxu1 %v2757_v51  ;;  %v4623_v39 = vld [vmem:[#allocation5_spill] sm:$0xff]  ;;  %v4626_v51 = vld [vmem:[#allocation6_spill] sm:$0xff] }
 0x128   :  { %2243 = vmatprep.subr.bf16.mxu0 %v2727_v42  ;;  %2371 = vmatprep.subr.bf16.mxu1 %v2769_v55  ;;  %v4624_v42 = vld [vmem:[#allocation4_spill] sm:$0xff] }
 0x129   :  { %631 = vmatmul.mubr.f32.gmra.mrb[6].mxu0 %v3422_v23  ;;  %785 = vmatmul.mubr.f32.gmra.mrb[6].mxu1 %v3422_v23  ;;  %v4628_v55 = vld [vmem:[#allocation8_spill] sm:$0xff] }
 0x12b   :  { %2245 = vmatpush1.bf16.msra.mxu0 %v2759_v52  ;;  %2373 = vmatpush1.bf16.msra.mxu1 %v2797_v63  ;;  %v4627_v52 = vld [vmem:[#allocation9_spill] sm:$0xff]  ;;  %v4630_v63 = vld [vmem:[#allocation10_spill] sm:$0xff] }
 0x12c   :  { %2247 = vmatprep.subr.bf16.mxu0 %v2771_v56  ;;  %2375 = vmatprep.subr.bf16.mxu1 %v2809_v4  ;;  %v4629_v56 = vld [vmem:[#allocation11_spill] sm:$0xff]  ;;  %v4632_v4 = vld [vmem:[#allocation12_spill] sm:$0xff] }
 0x12f   :  { %2249 = vmatpush1.bf16.msra.mxu0 %v2799_v0  ;;  %2377 = vmatpush1.bf16.msra.mxu1 %v2834_v12  ;;  %v4631_v0 = vld [vmem:[#allocation13_spill] sm:$0xff]  ;;  %v4634_v12 = vld [vmem:[#allocation14_spill] sm:$0xff] }
 0x130   :  { %2251 = vmatprep.subr.bf16.mxu0 %v2811_v5  ;;  %2379 = vmatprep.subr.bf16.mxu1 %v2846_v16  ;;  %v4633_v5 = vld [vmem:[#allocation15_spill] sm:$0xff]  ;;  %v4636_v16 = vld [vmem:[#allocation16_spill] sm:$0xff] }
 0x133   :  { %2253 = vmatpush1.bf16.msra.mxu0 %v2836_v13  ;;  %2381 = vmatpush1.bf16.msra.mxu1 %v2870_v24  ;;  %v4635_v13 = vld [vmem:[#allocation17_spill] sm:$0xff]  ;;  %v4638_v24 = vld [vmem:[#allocation18_spill] sm:$0xff] }
 0x134   :  { %2255 = vmatprep.subr.bf16.mxu0 %v2848_v17  ;;  %2383 = vmatprep.subr.bf16.mxu1 %v2882_v28  ;;  %v4637_v17 = vld [vmem:[#allocation19_spill] sm:$0xff]  ;;  %v4640_v28 = vld [vmem:[#allocation20_spill] sm:$0xff] }
 0x137   :  { %2257 = vmatpush1.bf16.msra.mxu0 %v2872_v25  ;;  %2385 = vmatpush1.bf16.msra.mxu1 %v2906_v37  ;;  %v4639_v25 = vld [vmem:[#allocation21_spill] sm:$0xff]  ;;  %v4642_v37 = vld [vmem:[#allocation23_spill] sm:$0xff] }
 0x138   :  { %2259 = vmatprep.subr.bf16.mxu0 %v2884_v29  ;;  %2387 = vmatprep.subr.bf16.mxu1 %v2918_v43  ;;  %v4641_v29 = vld [vmem:[#allocation22_spill] sm:$0xff] }
 0x13b   :  { %2261 = vmatpush1.bf16.msra.mxu0 %v2908_v38  ;;  %2389 = vmatpush1.bf16.msra.mxu1 %v2942_v54  ;;  %v4643_v38 = vld [vmem:[#allocation24_spill] sm:$0xff]  ;;  %v4644_v54 = vld [vmem:[#allocation25_spill] sm:$0xff] }
 0x13c   :  { %2263 = vmatprep.subr.bf16.mxu0 %v2920_v44  ;;  %2391 = vmatprep.subr.bf16.mxu1 %v2954_v60 }
 0x13f   :  { %2265 = vmatpush1.bf16.msra.mxu0 %v2944_v57  ;;  %2393 = vmatpush1.bf16.msra.mxu1 %v2978_v9 }
 0x140   :  { %2267 = vmatprep.subr.bf16.mxu0 %v2956_v61  ;;  %2395 = vmatprep.subr.bf16.mxu1 %v2990_v15 }
 0x143   :  { %2269 = vmatpush1.bf16.msra.mxu0 %v2980_v10  ;;  %2397 = vmatpush1.bf16.msra.mxu1 %v3014_v27  ;;  %v4645_v10 = vld [vmem:[#allocation28_spill] sm:$0xff] }
 0x144   :  { %2271 = vmatprep.subr.bf16.mxu0 %v2992_v18  ;;  %2399 = vmatprep.subr.bf16.mxu1 %v3026_v34  ;;  %v4646_v18 = vld [vmem:[#allocation37_spill] sm:$0xff] }
 0x147   :  { %2273 = vmatpush1.bf16.msra.mxu0 %v3016_v30  ;;  %2401 = vmatpush1.bf16.msra.mxu1 %v3050_v48 }
 0x148   :  { %2275 = vmatprep.subr.bf16.mxu0 %v3028_v35  ;;  %2403 = vmatprep.subr.bf16.mxu1 %v3062_v59 }
 0x14b   :  { %2277 = vmatpush1.bf16.msra.mxu0 %v3052_v49  ;;  %2405 = vmatpush1.bf16.msra.mxu1 %v3086_v14  ;;  %v4647_v49 = vld [vmem:[#allocation33_spill] sm:$0xff] }
 0x14c   :  { %2279 = vmatprep.subr.bf16.mxu0 %v3064_v62  ;;  %2407 = vmatprep.subr.bf16.mxu1 %v3098_v22  ;;  %v4648_v22 = vld [vmem:[#allocation36_spill] sm:$0xff] }
 0x14f   :  { %2281 = vmatpush1.bf16.msra.mxu0 %v3088_v19  ;;  %2409 = vmatpush1.bf16.msra.mxu1 %v3122_v45 }
 0x150   :  { %2283 = vmatprep.subr.bf16.mxu0 %v4622_v33  ;;  %2411 = vmatprep.subr.bf16.mxu1 %v4623_v39  ;;  %v4656_v33 = vld [vmem:[#allocation35_spill] sm:$0xff]  ;;  %v4657_v39 = vld [vmem:[#allocation38_spill] sm:$0xff] }
 0x153   :  { %2285 = vmatpush1.bf16.msra.mxu0 %v4624_v42  ;;  %2413 = vmatpush1.bf16.msra.mxu1 %v4625_v50  ;;  %v4658_v42 = vld [vmem:[#allocation39_spill] sm:$0xff]  ;;  %v4659_v50 = vld [vmem:[#allocation40_spill] sm:$0xff] }
 0x154   :  { %2287 = vmatprep.subr.bf16.mxu0 %v4626_v51  ;;  %2415 = vmatprep.subr.bf16.mxu1 %v4627_v52  ;;  %v4660_v51 = vld [vmem:[#allocation41_spill] sm:$0xff]  ;;  %v4661_v52 = vld [vmem:[#allocation42_spill] sm:$0xff] }
 0x157   :  { %2289 = vmatpush1.bf16.msra.mxu0 %v4628_v55  ;;  %2417 = vmatpush1.bf16.msra.mxu1 %v4629_v56  ;;  %v4662_v55 = vld [vmem:[#allocation43_spill] sm:$0xff]  ;;  %v4663_v56 = vld [vmem:[#allocation44_spill] sm:$0xff] }
 0x158   :  { %2291 = vmatprep.subr.bf16.mxu0 %v4630_v63  ;;  %2419 = vmatprep.subr.bf16.mxu1 %v4631_v0  ;;  %v4664_v63 = vld [vmem:[#allocation45_spill] sm:$0xff]  ;;  %v4665_v0 = vld [vmem:[#allocation46_spill] sm:$0xff] }
 0x15b   :  { %2293 = vmatpush1.bf16.msra.mxu0 %v4632_v4  ;;  %2421 = vmatpush1.bf16.msra.mxu1 %v4633_v5  ;;  %v4666_v4 = vld [vmem:[#allocation47_spill] sm:$0xff]  ;;  %v4667_v5 = vld [vmem:[#allocation48_spill] sm:$0xff] }
 0x15c   :  { %2295 = vmatprep.subr.bf16.mxu0 %v4634_v12  ;;  %2423 = vmatprep.subr.bf16.mxu1 %v4635_v13  ;;  %v4668_v12 = vld [vmem:[#allocation49_spill] sm:$0xff]  ;;  %v4669_v13 = vld [vmem:[#allocation50_spill] sm:$0xff] }
 0x15f   :  { %2297 = vmatpush1.bf16.msra.mxu0 %v4636_v16  ;;  %2425 = vmatpush1.bf16.msra.mxu1 %v4637_v17  ;;  %v4670_v16 = vld [vmem:[#allocation51_spill] sm:$0xff]  ;;  %v4671_v17 = vld [vmem:[#allocation52_spill] sm:$0xff] }
 0x160   :  { %2299 = vmatprep.subr.bf16.mxu0 %v4638_v24  ;;  %2427 = vmatprep.subr.bf16.mxu1 %v4639_v25  ;;  %v4672_v24 = vld [vmem:[#allocation53_spill] sm:$0xff]  ;;  %v4673_v25 = vld [vmem:[#allocation54_spill] sm:$0xff] }
 0x163   :  { %2301 = vmatpush1.bf16.msra.mxu0 %v4640_v28  ;;  %2429 = vmatpush1.bf16.msra.mxu1 %v4641_v29  ;;  %v4674_v28 = vld [vmem:[#allocation55_spill] sm:$0xff]  ;;  %v4675_v29 = vld [vmem:[#allocation56_spill] sm:$0xff] }
 0x164   :  { %2303 = vmatprep.subr.bf16.mxu0 %v4642_v37  ;;  %2431 = vmatprep.subr.bf16.mxu1 %v4643_v38  ;;  %v4676_v37 = vld [vmem:[#allocation57_spill] sm:$0xff]  ;;  %v4677_v38 = vld [vmem:[#allocation58_spill] sm:$0xff] }
 0x1f8   :  { %v626_v43 = vpop.f32.mrb[4].mxu0  ;;  %v780_v44 = vpop.f32.mrb[4].mxu1 }
 0x1f9   :  { %v3955_v57 = vsub.f32 %v4644_v54, %v626_v43  ;;  %v3958_v60 = vsub.f32 %v3376_v58, %v780_v44  ;;  %v628_v61 = vpop.f32.mrb[5].mxu0  ;;  %v782_v9 = vpop.f32.mrb[5].mxu1  ;;  %v4678_v43 = vld [vmem:[#allocation59_spill] sm:$0xff]  ;;  %v4679_v44 = vld [vmem:[#allocation60_spill] sm:$0xff]  ;;  %v4680_v54 = vld [vmem:[#allocation61_spill] sm:$0xff] }
 0x1fa   :  { %v3961_v15 = vsub.f32 %v4645_v10, %v628_v61  ;;  %v3964_v27 = vsub.f32 %v4646_v18, %v782_v9  ;;  %v4681_v61 = vld [vmem:[#allocation62_spill] sm:$0xff]  ;;  %v4682_v9 = vld [vmem:[#allocation63_spill] sm:$0xff]  ;;  %v4683_v10 = vld [vmem:[#allocation64_spill] sm:$0xff] }
 0x1fb   :  { %v799_v48 = vmul.f32 %v3955_v57, %v3955_v57  ;;  %v4684_v18 = vld [vmem:[#allocation65_spill] sm:$0xff] }
 0x1fc   :  { %v800_v30 = vmul.f32 %v3961_v15, %v3961_v15  ;;  %v632_v34 = vpop.f32.mrb[6].mxu0  ;;  %v786_v35 = vpop.f32.mrb[6].mxu1 }
 0x1fd   :  { %v3971_v59 = vsub.f32 %v4647_v49, %v632_v34  ;;  %v3974_v62 = vsub.f32 %v3422_v23, %v786_v35  ;;  %v634_v14 = vpop.f32.mrb[7].mxu0  ;;  %v788_v19 = vpop.f32.mrb[7].mxu1  ;;  %v4686_v34 = vld [vmem:[#allocation67_spill] sm:$0xff]  ;;  %v4687_v35 = vld [vmem:[#allocation68_spill] sm:$0xff]  ;;  %v4689_v49 = vld [vmem:[#allocation70_spill] sm:$0xff] }
 0x1fe   :  { %v3977_v45 = vsub.f32 %v4648_v22, %v634_v14  ;;  %v3980_v58 = vsub.f32 %v3439_v21, %v788_v19  ;;  %871 = vmatprep.mubr.f32.mxu0 %v800_v30  ;;  %1025 = vmatprep.mubr.f32.mxu1 %v800_v30  ;;  %v802_v21 = vmul.f32 %v3964_v27, %v3964_v27  ;;  %v4685_v30 = vld [vmem:[#allocation66_spill] sm:$0xff]  ;;  %v4690_v14 = vld [vmem:[#allocation71_spill] sm:$0xff]  ;;  %v4691_v19 = vld [vmem:[#allocation72_spill] sm:$0xff] }
 0x1ff   :  { %872 = vmatmul.mubr.f32.vlgmr.msra.gmra.mrb[8].mxu0 %v799_v48  ;;  %1026 = vmatmul.mubr.f32.vlgmr.msra.gmra.mrb[8].mxu1 %v799_v48  ;;  %v803_v23 = vmul.f32 %v3971_v59, %v3971_v59  ;;  %v4688_v48 = vld [vmem:[#allocation69_spill] sm:$0xff] }
 0x200   :  { %v804_v11 = vmul.f32 %v3977_v45, %v3977_v45  ;;  %2305 = vmatpush1.bf16.msra.mxu0 %v4649_v6  ;;  %2433 = vmatpush1.bf16.msra.mxu1 %v4650_v41  ;;  %v4692_v22 = vld [vmem:[#allocation73_spill] sm:$0xff]  ;;  %v4694_v6 = vld [vmem:[#allocation75_spill] sm:$0xff]  ;;  %v4695_v41 = vld [vmem:[#allocation76_spill] sm:$0xff] }
 0x201   :  { %2307 = vmatprep.subr.bf16.mxu0 %v4651_v46  ;;  %2435 = vmatprep.subr.bf16.mxu1 %v4652_v40  ;;  %v4697_v46 = vld [vmem:[#allocation78_spill] sm:$0xff]  ;;  %v4698_v40 = vld [vmem:[#allocation79_spill] sm:$0xff] }
 0x202   :  { %877 = vmatprep.mubr.f32.mxu0 %v804_v11  ;;  %1031 = vmatprep.mubr.f32.mxu1 %v804_v11  ;;  %v4693_v11 = vld [vmem:[#allocation74_spill] sm:$0xff] }
 0x203   :  { %878 = vmatmul.mubr.f32.gmra.mrb[10].mxu0 %v803_v23  ;;  %1032 = vmatmul.mubr.f32.gmra.mrb[10].mxu1 %v803_v23  ;;  %v4696_v23 = vld [vmem:[#allocation77_spill] sm:$0xff] }
 0x204   :  { %2309 = vmatpush1.bf16.msra.mxu0 %v4653_v53  ;;  %2437 = vmatpush1.bf16.msra.mxu1 %v4654_v1  ;;  %v4700_v53 = vld [vmem:[#allocation81_spill] sm:$0xff]  ;;  %v4701_v1 = vld [vmem:[#allocation82_spill] sm:$0xff] }
 0x205   :  { %948 = vmatprep.mubr.f32.mxu0 %v802_v21  ;;  %1102 = vmatprep.mubr.f32.mxu1 %v802_v21  ;;  %v4699_v21 = vld [vmem:[#allocation80_spill] sm:$0xff] }
 0x206   :  { %2311 = vmatprep.subr.bf16.mxu0 %v4655_v2  ;;  %2439 = vmatprep.subr.bf16.mxu1 %v4656_v33 }
 0x208   :  { %2313 = vmatpush1.bf16.msra.mxu0 %v4657_v39  ;;  %2441 = vmatpush1.bf16.msra.mxu1 %v4658_v42 }
 0x209   :  { %2315 = vmatprep.subr.bf16.mxu0 %v4659_v50  ;;  %2443 = vmatprep.subr.bf16.mxu1 %v4660_v51 }
 0x20c   :  { %2317 = vmatpush1.bf16.msra.mxu0 %v4661_v52  ;;  %2445 = vmatpush1.bf16.msra.mxu1 %v4662_v55 }
 0x20d   :  { %2319 = vmatprep.subr.bf16.mxu0 %v4663_v56  ;;  %2447 = vmatprep.subr.bf16.mxu1 %v4664_v63 }
 0x210   :  { %2321 = vmatpush1.bf16.msra.mxu0 %v4665_v0  ;;  %2449 = vmatpush1.bf16.msra.mxu1 %v4666_v4 }
 0x211   :  { %2323 = vmatprep.subr.bf16.mxu0 %v4667_v5  ;;  %2451 = vmatprep.subr.bf16.mxu1 %v4668_v12 }
 0x214   :  { %2325 = vmatpush1.bf16.msra.mxu0 %v4669_v13  ;;  %2453 = vmatpush1.bf16.msra.mxu1 %v4670_v16 }
 0x215   :  { %2327 = vmatprep.subr.bf16.mxu0 %v4671_v17  ;;  %2455 = vmatprep.subr.bf16.mxu1 %v4672_v24  ;;  %v1131_v24 = vld [vmem:[%s4454_s2] sm:$0xf] }
 0x218   :  { %2329 = vmatpush1.bf16.msra.mxu0 %v4673_v25  ;;  %2457 = vmatpush1.bf16.msra.mxu1 %v4674_v28 }
 0x219   :  { %2331 = vmatprep.subr.bf16.mxu0 %v4675_v29  ;;  %2459 = vmatprep.subr.bf16.mxu1 %v4676_v37  ;;  %v1161_v29 = vld [vmem:[%s4455_s3] sm:$0xf] }
 0x21c   :  { %2333 = vmatpush1.bf16.msra.mxu0 %v4677_v38  ;;  %2461 = vmatpush1.bf16.msra.mxu1 %v4678_v43 }
 0x21d   :  { %2335 = vmatprep.subr.bf16.mxu0 %v4679_v44  ;;  %2463 = vmatprep.subr.bf16.mxu1 %v4680_v54 }
 0x220   :  { %2337 = vmatpush1.bf16.msra.mxu0 %v4681_v61  ;;  %2465 = vmatpush1.bf16.msra.mxu1 %v4682_v9 }
 0x221   :  { %2339 = vmatprep.subr.bf16.mxu0 %v4683_v10  ;;  %2467 = vmatprep.subr.bf16.mxu1 %v4684_v18 }
 0x224   :  { %2341 = vmatpush1.bf16.msra.mxu0 %v4685_v30  ;;  %2469 = vmatpush1.bf16.msra.mxu1 %v4686_v34 }
 0x225   :  { %2343 = vmatprep.subr.bf16.mxu0 %v4687_v35  ;;  %2471 = vmatprep.subr.bf16.mxu1 %v4688_v48 }
 0x228   :  { %2345 = vmatpush1.bf16.msra.mxu0 %v4689_v49  ;;  %2473 = vmatpush1.bf16.msra.mxu1 %v4690_v14 }
 0x229   :  { %2347 = vmatprep.subr.bf16.mxu0 %v4691_v19  ;;  %2475 = vmatprep.subr.bf16.mxu1 %v4692_v22 }
 0x22c   :  { %2349 = vmatpush1.bf16.msra.mxu0 %v4693_v11  ;;  %2477 = vmatpush1.bf16.msra.mxu1 %v4694_v6 }
 0x22d   :  { %2351 = vmatprep.subr.bf16.mxu0 %v4695_v41  ;;  %2479 = vmatprep.subr.bf16.mxu1 %v4696_v23 }
 0x230   :  { %2353 = vmatpush1.bf16.msra.mxu0 %v4697_v46  ;;  %2481 = vmatpush1.bf16.msra.mxu1 %v4698_v40 }
 0x231   :  { %2355 = vmatprep.subr.bf16.mxu0 %v4699_v21  ;;  %2483 = vmatprep.subr.bf16.mxu1 %v4700_v53 }
 0x234   :  { %2357 = vmatpush1.bf16.msra.mxu0 %v3814_v32  ;;  %2485 = vmatpush1.bf16.msra.mxu1 %v4701_v1  ;;  %v801_v32 = vmul.f32 %v3958_v60, %v3958_v60 }
 0x235   :  { %2359 = vmatprep.subr.bf16.mxu0 %v3826_v31  ;;  %2487 = vmatprep.subr.bf16.mxu1 %v3828_v47  ;;  %v806_v31 = vmul.f32 %v3980_v58, %v3980_v58  ;;  %v805_v47 = vmul.f32 %v3974_v62, %v3974_v62 }
 0x238   :  { %2361 = vmatpush1.bf16.msra.mxu0 %v3850_v36  ;;  %2489 = vmatpush1.bf16.msra.mxu1 %v3852_v26  ;;  %v13_v36 = vstv %s4453_s7 }
 0x239   :  { %2363 = vmatprep.subr.bf16.mxu0 %v3859_v3  ;;  %2491 = vmatprep.subr.bf16.mxu1 %v3861_v8  ;;  %v4702_v3 = vmov 0.0   ;;  %v2571_v8 = vmov 0   ;;  %14 = vst [vmem:[#allocation2] sm:$0x1] %v13_v36 }
 0x23a   :  { %2537 = vset.pattern.permute.xlu0 %v2571_v8 }
 0x23c   :  { %2365 = vmatpush1.bf16.msra.mxu0 %v3874_v7  ;;  %2493 = vmatpush1.bf16.msra.mxu1 %v3876_v20  ;;  %v4541_v20 = vlaneseq }
 0x23e   :  { %v4062_v55 = vshrl.u32 %v4541_v20, 7 }
 0x23f   :  { %949 = vmatmul.mubr.f32.vlgmr.msra.gmra.mrb[8].mxu0 %v801_v32  ;;  %1103 = vmatmul.mubr.f32.vlgmr.msra.gmra.mrb[8].mxu1 %v801_v32 }
 0x240   :  { %954 = vmatprep.mubr.f32.mxu0 %v806_v31  ;;  %1108 = vmatprep.mubr.f32.mxu1 %v806_v31  ;;  %v1895_v26 = vld [vmem:[#allocation2] sm:$0x1]  ;;  %v4065_v17 = vsub.s32 0, %v4062_v55  ;;  %v4071_v25 = vsub.s32 2, %v4062_v55  ;;  %v4074_v28 = vsub.s32 1, %v4062_v55  ;;  %v4080_v37 = vsub.s32 3, %v4062_v55 }
 0x241   :  { %1898 = vperm.xlu0 %2537, %v1895_v26  }
 0x242   :  { %v1136_v38 = vrot.slane %v1131_v24, %v4065_v17  ;;  %v1144_v61 = vrot.slane %v1131_v24, %v4071_v25  ;;  %v1140_v9 = vrot.slane %v1131_v24, %v4074_v28  ;;  %v1166_v10 = vrot.slane %v1161_v29, %v4065_v17 }
 0x243   :  { %955 = vmatmul.mubr.f32.gmra.mrb[10].mxu0 %v805_v47  ;;  %1109 = vmatmul.mubr.f32.gmra.mrb[10].mxu1 %v805_v47  ;;  %v1148_v34 = vrot.slane %v1131_v24, %v4080_v37  ;;  %v1170_v14 = vrot.slane %v1161_v29, %v4074_v28  ;;  %v1178_v22 = vrot.slane %v1161_v29, %v4080_v37 }
 0x244   :  { %1304 = vmatprep.mubr.f32.mxu0 %v4702_v3  ;;  %1381 = vmatprep.mubr.f32.mxu1 %v4702_v3  ;;  %v1174_v11 = vrot.slane %v1161_v29, %v4071_v25 }
 0x312   :  { %v950_v7 = vpop.f32.mrb[8].mxu0  ;;  %v1104_v2 = vpop.f32.mrb[8].mxu1 }
 0x313   :  { %v2502_v33 = vadd.f32 1e-05, %v950_v7  ;;  %v2506_v39 = vadd.f32 1e-05, %v1104_v2  ;;  %v952_v42 = vpop.f32.mrb[9].mxu0  ;;  %v1106_v50 = vpop.f32.mrb[9].mxu1 }
 0x314   :  { %v2503_v51 = vadd.f32 1e-05, %v952_v42  ;;  %v2507_v52 = vadd.f32 1e-05, %v1106_v50 }
 0x315   :  { %2538 = vrsqrt.f32 %v2502_v33 }
 0x316   :  { %2540 = vrsqrt.f32 %v2506_v39  ;;  %v956_v56 = vpop.f32.mrb[10].mxu0  ;;  %v1110_v63 = vpop.f32.mrb[10].mxu1 }
 0x317   :  { %2542 = vrsqrt.f32 %v2503_v51  ;;  %v2504_v0 = vadd.f32 1e-05, %v956_v56  ;;  %v2508_v4 = vadd.f32 1e-05, %v1110_v63  ;;  %v958_v5 = vpop.f32.mrb[11].mxu0  ;;  %v1112_v12 = vpop.f32.mrb[11].mxu1 }
 0x318   :  { %2544 = vrsqrt.f32 %v2507_v52  ;;  %v2505_v13 = vadd.f32 1e-05, %v958_v5  ;;  %v2509_v16 = vadd.f32 1e-05, %v1112_v12 }
 0x319   :  { %2546 = vrsqrt.f32 %v2504_v0 }
 0x31a   :  { %2548 = vrsqrt.f32 %v2508_v4 }
 0x31b   :  { %2550 = vrsqrt.f32 %v2505_v13 }
 0x31c   :  { %2552 = vrsqrt.f32 %v2509_v16 }
 0x31f   :  { %v2539_v43 = vpop.eup %2538 }
 0x320   :  { %v2541_v44 = vpop.eup %2540  ;;  %v1123_v54 = vmul.f32 %v2539_v43, %v3955_v57 }
 0x321   :  { %v2543_v18 = vpop.eup %2542  ;;  %v1125_v30 = vmul.f32 %v2541_v44, %v3958_v60 }
 0x322   :  { %v2545_v35 = vpop.eup %2544  ;;  %v1153_v48 = vmul.f32 %v1136_v38, %v1123_v54  ;;  %v1124_v49 = vmul.f32 %v2543_v18, %v3961_v15 }
 0x323   :  { %v2547_v19 = vpop.eup %2546  ;;  %v1126_v57 = vmul.f32 %v2545_v35, %v3964_v27  ;;  %v1155_v41 = vmul.f32 %v1144_v61, %v1125_v30 }
 0x324   :  { %v2549_v6 = vpop.eup %2548  ;;  %v1127_v23 = vmul.f32 %v2547_v19, %v3971_v59  ;;  %v1154_v60 = vmul.f32 %v1140_v9, %v1124_v49  ;;  %v1183_v46 = vadd.f32 %v1166_v10, %v1153_v48 }
 0x325   :  { %v2551_v40 = vpop.eup %2550  ;;  %v1129_v21 = vmul.f32 %v2549_v6, %v3974_v62  ;;  %v1156_v53 = vmul.f32 %v1148_v34, %v1126_v57  ;;  %v1185_v59 = vadd.f32 %v1174_v11, %v1155_v41 }
 0x326   :  { %v2553_v15 = vpop.eup %2552  ;;  %v1157_v1 = vmul.f32 %v1136_v38, %v1127_v23  ;;  %v1128_v32 = vmul.f32 %v2551_v40, %v3977_v45  ;;  %v1184_v31 = vadd.f32 %v1170_v14, %v1154_v60  ;;  %v1199_v36 = vmul.f32 0.70710677, %v1183_v46 }
 0x327   :  { %v1159_v27 = vmul.f32 %v1144_v61, %v1129_v21  ;;  %v1130_v47 = vmul.f32 %v2553_v15, %v3980_v58  ;;  %v1186_v8 = vadd.f32 %v1178_v22, %v1156_v53  ;;  %v1201_v52 = vmul.f32 0.70710677, %v1185_v59 }
 0x328   :  { %v1158_v26 = vmul.f32 %v1140_v9, %v1128_v32  ;;  %v1200_v7 = vmul.f32 0.70710677, %v1184_v31  ;;  %v1187_v2 = vadd.f32 %v1166_v10, %v1157_v1  ;;  %2554 = verf.f32 %v1199_v36  ;;  %v1231_v1 = vld [vmem:[%s4456_s6] sm:$0xff]  ;;  %v1232_v32 = vld [vmem:[%s4456_s6 + $0x8] sm:$0x1]  ;;  %s2573_s6 = smov 16  }
 0x329   :  { %v1160_v33 = vmul.f32 %v1148_v34, %v1130_v47  ;;  %v1202_v39 = vmul.f32 0.70710677, %v1186_v8  ;;  %v1189_v51 = vadd.f32 %v1174_v11, %v1159_v27  ;;  %v1191_v16 = vmul.f32 0.5, %v1183_v46 }
 0x32a   :  { %v1188_v42 = vadd.f32 %v1170_v14, %v1158_v26  ;;  %2556 = verf.f32 %v1200_v7  ;;  %v1203_v62 = vmul.f32 0.70710677, %v1187_v2  ;;  %v1195_v24 = vmul.f32 0.5, %v1187_v2 }
 0x32b   :  { %v1190_v50 = vadd.f32 %v1178_v22, %v1160_v33  ;;  %2558 = verf.f32 %v1202_v39  ;;  %v1205_v58 = vmul.f32 0.70710677, %v1189_v51  ;;  %v1192_v43 = vmul.f32 0.5, %v1184_v31 }
 0x32c   :  { %v1204_v45 = vmul.f32 0.70710677, %v1188_v42  ;;  %2560 = verf.f32 %v1203_v62  ;;  %v1196_v61 = vmul.f32 0.5, %v1188_v42  ;;  %v1194_v34 = vmul.f32 0.5, %v1186_v8 }
 0x32d   :  { %v1206_v56 = vmul.f32 0.70710677, %v1190_v50  ;;  %v1198_v35 = vmul.f32 0.5, %v1190_v50  ;;  %v1193_v49 = vmul.f32 0.5, %v1185_v59  ;;  %v1197_v23 = vmul.f32 0.5, %v1189_v51 }
 0x32e   :  { %2562 = verf.f32 %v1204_v45 }
 0x32f   :  { %2564 = verf.f32 %v1206_v56 }
 0x330   :  { %2566 = verf.f32 %v1201_v52 }
 0x331   :  { %2568 = verf.f32 %v1205_v58 }
 0x332   :  { %v2555_v63 = vpop.eup %2554 }
 0x333   :  { %v1215_v5 = vadd.f32 1.0, %v2555_v63 }
 0x334   :  { %v2557_v0 = vpop.eup %2556 }
 0x335   :  { %v2559_v4 = vpop.eup %2558  ;;  %v1216_v13 = vadd.f32 1.0, %v2557_v0  ;;  %v1223_v10 = vmul.f32 %v1215_v5, %v1191_v16 }
 0x336   :  { %v2561_v12 = vpop.eup %2560  ;;  %v1218_v44 = vadd.f32 1.0, %v2559_v4 }
 0x337   :  { %v1219_v29 = vadd.f32 1.0, %v2561_v12  ;;  %v1224_v19 = vmul.f32 %v1216_v13, %v1192_v43 }
 0x338   :  { %v2563_v38 = vpop.eup %2562  ;;  %v1226_v6 = vmul.f32 %v1218_v44, %v1194_v34 }
 0x339   :  { %v2565_v54 = vpop.eup %2564  ;;  %v1220_v9 = vadd.f32 1.0, %v2563_v38  ;;  %v1227_v18 = vmul.f32 %v1219_v29, %v1195_v24 }
 0x33a   :  { %v2567_v30 = vpop.eup %2566  ;;  %v1222_v48 = vadd.f32 1.0, %v2565_v54  ;;  %v1899_v54 = vpop.permute.xlu0 %1898 }
 0x33b   :  { %v2569_v14 = vpop.eup %2568  ;;  %v1228_v57 = vmul.f32 %v1220_v9, %v1196_v61  ;;  %v2496_v22 = vpack.c.bf16 %v1227_v18, %v1223_v10  ;;  %v1217_v11 = vadd.f32 1.0, %v2567_v30 }
 0x33c   :  { %v1230_v41 = vmul.f32 %v1222_v48, %v1198_v35  ;;  %v1221_v60 = vadd.f32 1.0, %v2569_v14 }
 0x33d   :  { %v2494_v46 = vpack.c.bf16 %v1228_v57, %v1224_v19  ;;  %v1225_v21 = vmul.f32 %v1217_v11, %v1193_v49  ;;  %v4155_v11 = vand.u32 127, %v4541_v20 }
 0x33e   :  { %v2498_v40 = vpack.c.bf16 %v1230_v41, %v1226_v6  ;;  %v1229_v53 = vmul.f32 %v1221_v60, %v1197_v23  ;;  %v1409_v6 = vld [vmem:[%s4457_s5] ss:$8 sm:$0xf]  ;;  %v4165_v23 = vld [vmem:[%s4457_s5 + $0x1] ss:$8 sm:$0xf] }
 0x33f   :  { %2495 = vmatprep.subr.bf16.mxu0 %v2494_v46  ;;  %v4170_v46 = vrot.slane %v1899_v54, %v4065_v17  ;;  %vm1404_vm3 = vcmp.lt.s32.totalorder %v4155_v11, 17  ;;  %vm1471_vm4 = vcmp.lt.s32.totalorder %v4155_v11, 16  ;;  %vm1535_vm5 = vcmp.lt.s32.totalorder %v4155_v11, 15 }
 0x340   :  { %2499 = vmatprep.subr.bf16.mxu1 %v2498_v40  ;;  %2497 = vmatpush1.bf16.msra.mxu0 %v2496_v22  ;;  %v2500_v15 = vpack.c.bf16 %v1229_v53, %v1225_v21  ;;  %v1414_v40 = vrot.slane %v1409_v6, %v4065_v17  ;;  %v1426_v21 = vrot.slane %v1409_v6, %v4080_v37  ;;  %v4178_v53 = vld [vmem:[%s4457_s5 + $0x2] ss:$8 sm:$0xf]  ;;  %vm1599_vm6 = vcmp.lt.s32.totalorder %v4155_v11, 1 }
 0x341   :  { %vm1663_vm7 = vcmp.lt.s32.totalorder %v4155_v11, 127  ;;  %vm1727_vm8 = vcmp.lt.s32.totalorder %v4155_v11, 113  ;;  %vm1791_vm9 = vcmp.lt.s32.totalorder %v4155_v11, 112  ;;  %vm1847_vm10 = vcmp.lt.s32.totalorder %v4155_v11, 111 }
 0x342   :  { %2501 = vmatpush1.bf16.msra.mxu1 %v2500_v15  ;;  %v1418_v15 = vrot.slane %v1409_v6, %v4074_v28 }
 0x343   :  { %1955 = vmatmul.mubr.msk.f32.vlgmr.msra.gmra.mrb[12].mxu0 %vm1233_vm2, %v1231_v1 }
 0x344   :  { %1310 = vmatprep.mubr.f32.mxu0 %v4702_v3 }
 0x345   :  { %1957 = vmatmul.mubr.msk.f32.vlgmr.msra.gmra.mrb[12].mxu1 %vm1233_vm2, %v1231_v1  ;;  %v1422_v1 = vrot.slane %v1409_v6, %v4071_v25 }
 0x346   :  { %1387 = vmatprep.mubr.f32.mxu1 %v4702_v3 }
 0x347   :  { %1956 = vmatmul.mubr.msk.f32.gmra.mrb[14].mxu0 %vm1233_vm2, %v1232_v32 }
 0x349   :  { %1958 = vmatmul.mubr.msk.f32.gmra.mrb[14].mxu1 %vm1233_vm2, %v1232_v32  ;;  %v1486_v32 = vrot.slane %v4165_v23, %v4074_v28 }
 0x416   :  { %v4106_v31 = vpop.f32.mrb[12].mxu0 }
 0x417   :  { %1394 = vrot.lane.b32.xlu0 %v4106_v31, %s2572_s19  ;;  %v4109_v27 = vpop.f32.mrb[13].mxu0  ;;  %v1455_v3 = vrot.slane %v4106_v31, 1  ;;  %v1519_v42 = vrot.slane %v4106_v31, 2  ;;  %v1583_v45 = vrot.slane %v4106_v31, 3  ;;  %v1647_v63 = vrot.slane %v4106_v31, 5 }
 0x418   :  { %v4111_v47 = vpop.f32.mrb[12].mxu1  ;;  %v1456_v2 = vrot.slane %v4109_v27, 1  ;;  %v1520_v62 = vrot.slane %v4109_v27, 2  ;;  %v1584_v52 = vrot.slane %v4109_v27, 3  ;;  %v1648_v0 = vrot.slane %v4109_v27, 5 }
 0x419   :  { %1398 = vrot.lane.b32.xlu1 %v4111_v47, %s2572_s19  ;;  %v4114_v8 = vpop.f32.mrb[13].mxu1  ;;  %v1457_v33 = vrot.slane %v4111_v47, 1  ;;  %v1521_v50 = vrot.slane %v4111_v47, 2  ;;  %v1585_v56 = vrot.slane %v4111_v47, 3  ;;  %v1649_v4 = vrot.slane %v4111_v47, 5 }
 0x41a   :  { %v1312_v36 = vpop.f32.mrb[14].mxu0  ;;  %v1458_v39 = vrot.slane %v4114_v8, 1  ;;  %v1522_v51 = vrot.slane %v4114_v8, 2  ;;  %v1586_v58 = vrot.slane %v4114_v8, 3  ;;  %v1650_v5 = vrot.slane %v4114_v8, 5 }
 0x41b   :  { %1396 = vrot.lane.b32.xlu0 %v4109_v27, %s2572_s19  ;;  %v1314_v26 = vpop.f32.mrb[15].mxu0  ;;  %v1711_v12 = vrot.slane %v4106_v31, 6  ;;  %v1712_v13 = vrot.slane %v4109_v27, 6  ;;  %v1713_v16 = vrot.slane %v4111_v47, 6  ;;  %v1714_v24 = vrot.slane %v4114_v8, 6 }
 0x41c   :  { %v1389_v7 = vpop.f32.mrb[14].mxu1  ;;  %v1775_v29 = vrot.slane %v4106_v31, 7  ;;  %v1776_v38 = vrot.slane %v4109_v27, 7  ;;  %v1777_v43 = vrot.slane %v4111_v47, 7  ;;  %v1778_v44 = vrot.slane %v4114_v8, 7 }
 0x41d   :  { %1400 = vrot.lane.b32.xlu1 %v4114_v8, %s2572_s19  ;;  %v1391_v59 = vpop.f32.mrb[15].mxu1 }
 0x41f   :  { %1463 = vrot.lane.b32.xlu0 %v1455_v3, %s2573_s6 }
 0x421   :  { %1465 = vrot.lane.b32.xlu1 %v1456_v2, %s2573_s6  ;;  %v1494_v2 = vrot.slane %v4165_v23, %v4080_v37 }
 0x423   :  { %1467 = vrot.lane.b32.xlu0 %v1457_v33, %s2573_s6  ;;  %v1550_v33 = vrot.slane %v4178_v53, %v4074_v28 }
 0x425   :  { %1469 = vrot.lane.b32.xlu1 %v1458_v39, %s2573_s6  ;;  %v1554_v39 = vrot.slane %v4178_v53, %v4071_v25 }
 0x427   :  { %1527 = vrot.lane.b32.xlu0 %v1519_v42, %s2574_s20  ;;  %v1546_v42 = vrot.slane %v4178_v53, %v4065_v17 }
 0x429   :  { %1529 = vrot.lane.b32.xlu1 %v1520_v62, %s2574_s20  ;;  %v1558_v62 = vrot.slane %v4178_v53, %v4080_v37 }
 0x42b   :  { %1531 = vrot.lane.b32.xlu0 %v1521_v50, %s2574_s20 }
 0x42d   :  { %1533 = vrot.lane.b32.xlu1 %v1522_v51, %s2574_s20 }
 0x42f   :  { %1591 = vrot.lane.b32.xlu0 %v1583_v45, %s2575_s21 }
 0x431   :  { %1593 = vrot.lane.b32.xlu1 %v1584_v52, %s2575_s21 }
 0x433   :  { %1595 = vrot.lane.b32.xlu0 %v1585_v56, %s2575_s21 }
 0x435   :  { %1597 = vrot.lane.b32.xlu1 %v1586_v58, %s2575_s21  ;;  %v4225_v58 = vld [vmem:[%s4457_s5 + $0x6] ss:$8 sm:$0xf] }
 0x437   :  { %1655 = vrot.lane.b32.xlu0 %v1647_v63, %s2576_s22 }
 0x439   :  { %1657 = vrot.lane.b32.xlu1 %v1648_v0, %s2576_s22 }
 0x43b   :  { %1659 = vrot.lane.b32.xlu0 %v1649_v4, %s2576_s22 }
 0x43d   :  { %1661 = vrot.lane.b32.xlu1 %v1650_v5, %s2576_s22 }
 0x43f   :  { %1719 = vrot.lane.b32.xlu0 %v1711_v12, %s2577_s0 }
 0x441   :  { %1721 = vrot.lane.b32.xlu1 %v1712_v13, %s2577_s0 }
 0x443   :  { %1723 = vrot.lane.b32.xlu0 %v1713_v16, %s2577_s0 }
 0x445   :  { %1725 = vrot.lane.b32.xlu1 %v1714_v24, %s2577_s0 }
 0x447   :  { %1783 = vrot.lane.b32.xlu0 %v1775_v29, %s2578_s23 }
 0x449   :  { %1785 = vrot.lane.b32.xlu1 %v1776_v38, %s2578_s23 }
 0x44b   :  { %1787 = vrot.lane.b32.xlu0 %v1777_v43, %s2578_s23  ;;  %v1738_v43 = vrot.slane %v4225_v58, %v4065_v17 }
 0x44d   :  { %1789 = vrot.lane.b32.xlu1 %v1778_v44, %s2578_s23  ;;  %v1742_v44 = vrot.slane %v4225_v58, %v4074_v28 }
 0x44f   :  { %1843 = vrot.lane.b32.xlu0 %v1389_v7, %s2579_s24  ;;  %v1482_v7 = vrot.slane %v4165_v23, %v4065_v17 }
 0x451   :  { %1839 = vrot.lane.b32.xlu1 %v1312_v36, %s2579_s24  ;;  %v4188_v36 = vld [vmem:[%s4457_s5 + $0x3] ss:$8 sm:$0xf] }
 0x452   :  { %v1614_v51 = vrot.slane %v4188_v36, %v4074_v28  ;;  %v1618_v45 = vrot.slane %v4188_v36, %v4071_v25  ;;  %v1610_v52 = vrot.slane %v4188_v36, %v4065_v17  ;;  %v1622_v56 = vrot.slane %v4188_v36, %v4080_v37 }
 0x455   :  { %1841 = vrot.lane.b32.xlu1 %v1314_v26, %s2579_s24  ;;  %v1490_v26 = vrot.slane %v4165_v23, %v4071_v25 }
 0x459   :  { %1845 = vrot.lane.b32.xlu1 %v1391_v59, %s2579_s24  ;;  %v4202_v59 = vld [vmem:[%s4457_s5 + $0x5] ss:$8 sm:$0xf] }
 0x45a   :  { %v1674_v4 = vrot.slane %v4202_v59, %v4065_v17  ;;  %v1678_v12 = vrot.slane %v4202_v59, %v4074_v28  ;;  %v1682_v24 = vrot.slane %v4202_v59, %v4071_v25 }
 0x489   :  { %v1395_v61 = vpop.permute.xlu0 %1394 }
 0x48b   :  { %v1399_v9 = vpop.permute.xlu1 %1398 }
 0x48d   :  { %v1397_v10 = vpop.permute.xlu0 %1396 }
 0x48e   :  { %v1406_v63 = vsel %vm1404_vm3, %v1397_v10, %v1399_v9  ;;  %v1407_v0 = vsel %vm1404_vm3, %v1395_v61, %v1397_v10 }
 0x48f   :  { %v1401_v18 = vpop.permute.xlu1 %1400  ;;  %v1432_v10 = vmul.f32 %v1418_v15, %v1407_v0 }
 0x490   :  { %v1405_v13 = vsel %vm1404_vm3, %v1399_v9, %v1401_v18  ;;  %v1408_v16 = vsel %vm1404_vm3, %v1401_v18, %v1395_v61  ;;  %v4259_v9 = vld [vmem:[%s4457_s5 + $0x7] ss:$8 sm:$0xf]  ;;  %v1433_v18 = vmul.f32 %v1422_v1, %v1406_v63  ;;  %v4293_v63 = vld [vmem:[%s4457_s5 + $0x20] ss:$8 sm:$0xf] }
 0x491   :  { %v4142_v30 = vpop.permute.xlu0 %1463  ;;  %v1431_v53 = vmul.f32 %v1414_v40, %v1408_v16  ;;  %v1434_v20 = vmul.f32 %v1426_v21, %v1405_v13 }
 0x493   :  { %v1466_v34 = vpop.permute.xlu1 %1465  ;;  %v1442_v16 = vrot.slane %v1434_v20, 4  ;;  %v1862_v20 = vrot.slane %v4293_v63, %v4074_v28 }
 0x494   :  { %v1474_v6 = vsel %vm1471_vm4, %v4142_v30, %v1466_v34 }
 0x495   :  { %v1468_v35 = vpop.permute.xlu0 %1467  ;;  %v1500_v40 = vmul.f32 %v1486_v32, %v1474_v6  ;;  %v1440_v6 = vrot.slane %v1432_v10, 4 }
 0x496   :  { %v1473_v23 = vsel %vm1471_vm4, %v1466_v34, %v1468_v35 }
 0x497   :  { %v1470_v48 = vpop.permute.xlu1 %1469  ;;  %v1501_v21 = vmul.f32 %v1490_v26, %v1473_v23  ;;  %v1441_v23 = vrot.slane %v1433_v18, 4  ;;  %v1508_v10 = vrot.slane %v1500_v40, 4 }
 0x498   :  { %v1472_v54 = vsel %vm1471_vm4, %v1468_v35, %v1470_v48  ;;  %v1475_v61 = vsel %vm1471_vm4, %v1470_v48, %v4142_v30 }
 0x499   :  { %v4144_v49 = vpop.permute.xlu0 %1527  ;;  %v1499_v0 = vmul.f32 %v1482_v7, %v1475_v61  ;;  %v1502_v32 = vmul.f32 %v1494_v2, %v1472_v54  ;;  %v1814_v2 = vrot.slane %v4259_v9, %v4080_v37 }
 0x49b   :  { %v4146_v14 = vpop.permute.xlu1 %1529  ;;  %v1510_v18 = vrot.slane %v1502_v32, 4 }
 0x49c   :  { %v1538_v30 = vsel %vm1535_vm5, %v4144_v49, %v4146_v14 }
 0x49d   :  { %v4148_v19 = vpop.permute.xlu0 %1531  ;;  %v1564_v1 = vmul.f32 %v1550_v33, %v1538_v30  ;;  %v1509_v33 = vrot.slane %v1501_v21, 4  ;;  %v1450_v30 = vadd.f32 %v1442_v16, %v4114_v8 }
 0x49e   :  { %v1537_v35 = vsel %vm1535_vm5, %v4146_v14, %v4148_v19  ;;  %v1439_v14 = vrot.slane %v1431_v53, 4 }
 0x49f   :  { %v4150_v57 = vpop.permute.xlu1 %1533  ;;  %v1565_v7 = vmul.f32 %v1554_v39, %v1537_v35  ;;  %v1507_v39 = vrot.slane %v1499_v0, 4 }
 0x4a0   :  { %v1536_v26 = vsel %vm1535_vm5, %v4148_v19, %v4150_v57  ;;  %v1539_v13 = vsel %vm1535_vm5, %v4150_v57, %v4144_v49  ;;  %v1858_v19 = vrot.slane %v4293_v63, %v4065_v17  ;;  %v2580_v49 = vmov 1966171168  }
 0x4a1   :  { %v4152_v22 = vpop.permute.xlu0 %1591  ;;  %v1563_v54 = vmul.f32 %v1546_v42, %v1539_v13  ;;  %v1566_v61 = vmul.f32 %v1558_v62, %v1536_v26  ;;  %v4311_v57 = vunpack.c.l.s4 %v2580_v49  ;;  %v1447_v53 = vadd.f32 %v1439_v14, %v4106_v31 }
 0x4a2   :  { %v1448_v42 = vadd.f32 %v1440_v6, %v4109_v27  ;;  %v1449_v62 = vadd.f32 %v1441_v23, %v4111_v47  ;;  %v1572_v26 = vrot.slane %v1564_v1, 4  ;;  %v1573_v13 = vrot.slane %v1565_v7, 4 }
 0x4a3   :  { %v4160_v41 = vpop.permute.xlu1 %1593  ;;  %v1571_v31 = vrot.slane %v1563_v54, 4  ;;  %v1574_v21 = vrot.slane %v1566_v61, 4  ;;  %v1515_v32 = vadd.f32 %v1507_v39, %v1447_v53  ;;  %v1518_v14 = vadd.f32 %v1510_v18, %v1450_v30 }
 0x4a4   :  { %v1602_v49 = vsel %vm1599_vm6, %v4152_v22, %v4160_v41  ;;  %v1516_v1 = vadd.f32 %v1508_v10, %v1448_v42  ;;  %v1517_v0 = vadd.f32 %v1509_v33, %v1449_v62  ;;  %v1870_v23 = vrot.slane %v4293_v63, %v4080_v37 }
 0x4a5   :  { %v4167_v60 = vpop.permute.xlu0 %1595  ;;  %v1579_v61 = vadd.f32 %v1571_v31, %v1515_v32  ;;  %v1582_v10 = vadd.f32 %v1574_v21, %v1518_v14  ;;  %v4707_v32 = vrot.slane %v4225_v58, %v4080_v37 }
 0x4a6   :  { %v1601_v40 = vsel %vm1599_vm6, %v4160_v41, %v4167_v60  ;;  %v1628_v41 = vmul.f32 %v1614_v51, %v1602_v49  ;;  %v1580_v7 = vadd.f32 %v1572_v26, %v1516_v1  ;;  %v1581_v54 = vadd.f32 %v1573_v13, %v1517_v0 }
 0x4a7   :  { %v4190_v3 = vpop.permute.xlu1 %1597  ;;  %v1629_v16 = vmul.f32 %v1618_v45, %v1601_v40  ;;  %v1866_v45 = vrot.slane %v4293_v63, %v4071_v25 }
 0x4a8   :  { %v1600_v27 = vsel %vm1599_vm6, %v4167_v60, %v4190_v3  ;;  %v1603_v47 = vsel %vm1599_vm6, %v4190_v3, %v4152_v22  ;;  %v1636_v39 = vrot.slane %v1628_v41, 4 }
 0x4a9   :  { %v4212_v50 = vpop.permute.xlu0 %1655  ;;  %v1627_v6 = vmul.f32 %v1610_v52, %v1603_v47  ;;  %v1630_v51 = vmul.f32 %v1622_v56, %v1600_v27  ;;  %v1637_v18 = vrot.slane %v1629_v16, 4 }
 0x4ab   :  { %v4233_v5 = vpop.permute.xlu1 %1657  ;;  %v1635_v30 = vrot.slane %v1627_v6, 4  ;;  %v1638_v42 = vrot.slane %v1630_v51, 4  ;;  %v1645_v1 = vadd.f32 %v1637_v18, %v1581_v54 }
 0x4ac   :  { %v1666_v60 = vsel %vm1663_vm7, %v4212_v50, %v4233_v5 }
 0x4ad   :  { %v4246_v38 = vpop.permute.xlu0 %1659  ;;  %v1691_v52 = vmul.f32 %v1674_v4, %v1666_v60  ;;  %v1643_v41 = vadd.f32 %v1635_v30, %v1579_v61  ;;  %v1646_v16 = vadd.f32 %v1638_v42, %v1582_v10 }
 0x4ae   :  { %v1665_v22 = vsel %vm1663_vm7, %v4233_v5, %v4246_v38 }
 0x4af   :  { %v4271_v29 = vpop.permute.xlu1 %1661  ;;  %v1692_v36 = vmul.f32 %v1678_v12, %v1665_v22  ;;  %v1699_v13 = vrot.slane %v1691_v52, 4 }
 0x4b0   :  { %v1664_v53 = vsel %vm1663_vm7, %v4246_v38, %v4271_v29  ;;  %v1667_v4 = vsel %vm1663_vm7, %v4271_v29, %v4212_v50 }
 0x4b1   :  { %v4288_v48 = vpop.permute.xlu0 %1719  ;;  %v1700_v49 = vrot.slane %v1692_v36, 4  ;;  %v1693_v40 = vmul.f32 %v1682_v24, %v1664_v53  ;;  %v1644_v24 = vadd.f32 %v1636_v39, %v1580_v7 }
 0x4b3   :  { %v1722_v34 = vpop.permute.xlu1 %1721  ;;  %v1701_v6 = vrot.slane %v1693_v40, 4  ;;  %v1708_v52 = vadd.f32 %v1700_v49, %v1644_v24 }
 0x4b4   :  { %v1730_v56 = vsel %vm1727_vm8, %v4288_v48, %v1722_v34 }
 0x4b5   :  { %v1724_v15 = vpop.permute.xlu0 %1723  ;;  %v1755_v26 = vmul.f32 %v1738_v43, %v1730_v56  ;;  %v4703_v43 = vrot.slane %v4202_v59, %v4080_v37  ;;  %v4706_v59 = vrot.slane %v4225_v58, %v4071_v25 }
 0x4b6   :  { %v1729_v33 = vsel %vm1727_vm8, %v1722_v34, %v1724_v15 }
 0x4b7   :  { %v1726_v35 = vpop.permute.xlu1 %1725  ;;  %v1756_v38 = vmul.f32 %v1742_v44, %v1729_v33  ;;  %v1694_v31 = vmul.f32 %v4703_v43, %v1667_v4  ;;  %v4704_v44 = vrot.slane %v4259_v9, %v4065_v17  ;;  %v1763_v60 = vrot.slane %v1755_v26, 4 }
 0x4b8   :  { %v1728_v50 = vsel %vm1727_vm8, %v1724_v15, %v1726_v35  ;;  %v1731_v29 = vsel %vm1727_vm8, %v1726_v35, %v4288_v48  ;;  %v4705_v15 = vrot.slane %v4259_v9, %v4074_v28  ;;  %v1709_v4 = vadd.f32 %v1701_v6, %v1645_v1 }
 0x4b9   :  { %v1784_v8 = vpop.permute.xlu0 %1783  ;;  %v1757_v0 = vmul.f32 %v4706_v59, %v1728_v50  ;;  %v1758_v14 = vmul.f32 %v4707_v32, %v1731_v29  ;;  %v1764_v22 = vrot.slane %v1756_v38, 4  ;;  %v1702_v51 = vrot.slane %v1694_v31, 4 }
 0x4bb   :  { %v1786_v3 = vpop.permute.xlu1 %1785  ;;  %v1765_v61 = vrot.slane %v1757_v0, 4  ;;  %v1766_v10 = vrot.slane %v1758_v14, 4  ;;  %v1772_v53 = vadd.f32 %v1764_v22, %v1708_v52 }
 0x4bc   :  { %v1794_v62 = vsel %vm1791_vm9, %v1784_v8, %v1786_v3 }
 0x4bd   :  { %v1788_v5 = vpop.permute.xlu0 %1787  ;;  %v1819_v21 = vmul.f32 %v4704_v44, %v1794_v62  ;;  %v1773_v29 = vadd.f32 %v1765_v61, %v1709_v4  ;;  %v1917_v44 = vunpack.c.0.s8 %v4311_v57  ;;  %v4709_v57 = vlaneseq }
 0x4be   :  { %v1793_v34 = vsel %vm1791_vm9, %v1786_v3, %v1788_v5 }
 0x4bf   :  { %v1790_v12 = vpop.permute.xlu1 %1789  ;;  %v1820_v27 = vmul.f32 %v4705_v15, %v1793_v34  ;;  %v1827_v36 = vrot.slane %v1819_v21, 4  ;;  %vm1940_vm11 = vcmp.lt.s32.totalorder %v4709_v57, 512 }
 0x4c0   :  { %v1792_v48 = vsel %vm1791_vm9, %v1788_v5, %v1790_v12  ;;  %v1795_v35 = vsel %vm1791_vm9, %v1790_v12, %v1784_v8  ;;  %v4708_v8 = vrot.slane %v4259_v9, %v4071_v25  ;;  %v1707_v5 = vadd.f32 %v1699_v13, %v1643_v41 }
 0x4c1   :  { %v1844_v3 = vpop.permute.xlu0 %1843  ;;  %v1822_v54 = vmul.f32 %v1814_v2, %v1795_v35  ;;  %v1828_v58 = vrot.slane %v1820_v27, 4  ;;  %v1710_v12 = vadd.f32 %v1702_v51, %v1646_v16  ;;  %v1920_v25 = vsub.s32 %v1917_v44, %v4062_v55 }
 0x4c2   :  { %v1821_v7 = vmul.f32 %v4708_v8, %v1792_v48  ;;  %v1771_v18 = vadd.f32 %v1763_v60, %v1707_v5 }
 0x4c3   :  { %v1840_v47 = vpop.permute.xlu1 %1839  ;;  %v1830_v42 = vrot.slane %v1822_v54, 4  ;;  %v1836_v34 = vadd.f32 %v1828_v58, %v1772_v53  ;;  %v1774_v13 = vadd.f32 %v1766_v10, %v1710_v12 }
 0x4c4   :  { %v1829_v30 = vrot.slane %v1821_v7, 4  ;;  %v1835_v62 = vadd.f32 %v1827_v36, %v1771_v18 }
 0x4c5   :  { %v1838_v31 = vadd.f32 %v1830_v42, %v1774_v13 }
 0x4c6   :  { %v1837_v43 = vadd.f32 %v1829_v30, %v1773_v29 }
 0x4c7   :  { %v1842_v56 = vpop.permute.xlu1 %1841 }
 0x4c8   :  { %v1849_v33 = vsel %vm1847_vm10, %v1842_v56, %v1844_v3  ;;  %v1850_v39 = vsel %vm1847_vm10, %v1840_v47, %v1842_v56 }
 0x4c9   :  { %v1875_v9 = vmul.f32 %v1858_v19, %v1850_v39  ;;  %v1876_v2 = vmul.f32 %v1862_v20, %v1849_v33 }
 0x4cb   :  { %v1883_v26 = vrot.slane %v1875_v9, 4  ;;  %v1884_v38 = vrot.slane %v1876_v2, 4  ;;  %v1846_v50 = vpop.permute.xlu1 %1845 }
 0x4cc   :  { %v1848_v49 = vsel %vm1847_vm10, %v1844_v3, %v1846_v50  ;;  %v1851_v17 = vsel %vm1847_vm10, %v1846_v50, %v1840_v47 }
 0x4cd   :  { %v1891_v19 = vadd.f32 %v1883_v26, %v1835_v62  ;;  %v1892_v28 = vadd.f32 %v1884_v38, %v1836_v34  ;;  %v1877_v20 = vmul.f32 %v1866_v45, %v1848_v49  ;;  %v1878_v40 = vmul.f32 %v1870_v23, %v1851_v17 }
 0x4cf   :  { %v1905_v21 = vadd.f32 %v4170_v46, %v1891_v19  ;;  %v1906_v15 = vadd.f32 %v4170_v46, %v1892_v28  ;;  %v1885_v11 = vrot.slane %v1877_v20, 4  ;;  %v1886_v27 = vrot.slane %v1878_v40, 4 }
 0x4d1   :  { %v1913_v48 = vcombine.high %v1905_v21, %v1906_v15  ;;  %v1893_v35 = vadd.f32 %v1885_v11, %v1837_v43  ;;  %v1894_v47 = vadd.f32 %v1886_v27, %v1838_v31 }
 0x4d3   :  { %v1907_v45 = vadd.f32 %v4170_v46, %v1893_v35  ;;  %v1908_v37 = vadd.f32 %v4170_v46, %v1894_v47  ;;  %v1921_v23 = vrot.slane %v1913_v48, %v1920_v25 }
 0x4d5   :  { %v1914_v63 = vcombine.high %v1907_v45, %v1908_v37 }
 0x4d7   :  { %v1928_v24 = vrot.slane %v1914_v63, %v1920_v25 }
 0x4d9   :  { %v1929_v1 = vcombine.low %v1921_v23, %v1928_v24 }
 0x4db   :  { %v1936_v59 = vrot.slane %v1929_v1, %v1920_v25 }
 0x4dd   :  { %1942 = vst.msk [vmem:[%s4458_s8] sm:$0xf] %vm1940_vm11, %v1936_v59 }

</bundles_post_ra>
